<compile_context>
chip_gen: v5e
topology: v5e:2x2
jax: 0.10.0
libtpu: 0.0.40
codegen_flags: <defaults>
</compile_context>

<pallas_src>
import math

import jax
import jax.numpy as jnp
from jax.experimental import pallas as pl
from jax.experimental.pallas import tpu as pltpu


def _p3d_fused_kernel(x_ref, ws_ref, wt_ref, o_ref, y_sc):
    # x_ref : (1, T, H+2, W+2, Cin)   spatially pre-padded, channels-last
    # ws_ref: (9, Cin, Cm_p)          3x3 spatial taps (kh*3+kw), Cmid lane-padded
    # wt_ref: (3, Cm_p, Co_p)         temporal taps, Cout lane-padded
    # o_ref : (1, T, H*W, Co_p)
    # y_sc  : ((T+2)*H*W, Cm_p)       VMEM scratch: ReLU'd spatial out + T halo
    _, T, Hp, Wp, Cin = x_ref.shape
    H, W = Hp - 2, Wp - 2
    HW = H * W
    M = T * HW
    Cm_p = ws_ref.shape[2]
    Co_p = wt_ref.shape[2]

    # ---- stage 1: (1,3,3) spatial conv, batched over all T frames ----
    x = x_ref[0]                                     # (T, Hp, Wp, Cin)
    acc = jnp.zeros((M, Cm_p), jnp.float32)
    for kh in range(3):                              # static unroll: 9 matmuls
        for kw in range(3):
            tap = x[:, kh:kh + H, kw:kw + W, :].reshape(M, Cin)
            acc = acc + jnp.dot(tap, ws_ref[kh * 3 + kw],
                                preferred_element_type=jnp.float32)
    y_relu = jnp.maximum(acc, 0.0)                   # (M, Cm_p), stays on-chip

    # Temporal zero halo (PyTorch conT padding=(1,0,0)) + interior rows.
    zero_row = jnp.zeros((HW, Cm_p), jnp.float32)
    y_sc[pl.ds(0, HW)] = zero_row
    y_sc[pl.ds((T + 1) * HW, HW)] = zero_row
    y_sc[pl.ds(HW, M)] = y_relu

    # ---- stage 2: (3,1,1) temporal conv as 3 big matmuls over (T*HW, Cm_p) ----
    # Center tap (kt=1) reuses the live value; shifted taps read the scratch.
    acc2 = jnp.dot(y_relu, wt_ref[1], preferred_element_type=jnp.float32)
    for kt in (0, 2):
        y_shift = y_sc[pl.ds(kt * HW, M)]            # contiguous shifted window
        acc2 = acc2 + jnp.dot(y_shift, wt_ref[kt],
                              preferred_element_type=jnp.float32)
    o_ref[0] = acc2.reshape(T, HW, Co_p).astype(o_ref.dtype)


def _ceil_to(v, m):
    return ((v + m - 1) // m) * m


def p3d_conv_a(x, wS, wT):
    """x: (N, Cin, T, H, W); wS: (Cmid, Cin, 1, 3, 3); wT: (Cout, Cmid, 3, 1, 1)."""
    N, Cin, T, H, W = x.shape
    Cmid = wS.shape[0]
    Cout = wT.shape[0]
    HW = H * W

    LANE = 128
    Cm_p = _ceil_to(Cmid, LANE)
    Co_p = _ceil_to(Cout, LANE)

    # NCDHW -> channels-last, plus the 1px H/W halo. The pad fuses into the
    # transpose copy under jit, so this is a single HBM pass over x (which the
    # MXU-friendly layout change requires anyway).
    x_cl = jnp.transpose(x, (0, 2, 3, 4, 1))                      # (N, T, H, W, Cin)
    x_cl = jnp.pad(x_cl, ((0, 0), (0, 0), (1, 1), (1, 1), (0, 0)))

    # Spatial weights (Cmid, Cin, 1, 3, 3) -> (9, Cin, Cm_p), tap index kh*3+kw.
    ws = jnp.transpose(wS[:, :, 0, :, :], (2, 3, 1, 0)).reshape(9, Cin, Cmid)
    ws = jnp.pad(ws, ((0, 0), (0, 0), (0, Cm_p - Cmid))).astype(jnp.float32)

    # Temporal weights (Cout, Cmid, 3, 1, 1) -> (3, Cm_p, Co_p).
    wt = jnp.transpose(wT[:, :, :, 0, 0], (2, 1, 0))              # (3, Cmid, Cout)
    wt = jnp.pad(wt, ((0, 0), (0, Cm_p - Cmid), (0, Co_p - Cout))).astype(jnp.float32)

    out_p = pl.pallas_call(
        _p3d_fused_kernel,
        out_shape=jax.ShapeDtypeStruct((N, T, HW, Co_p), x.dtype),
        grid=(N,),
        in_specs=[
            pl.BlockSpec((1, T, H + 2, W + 2, Cin), lambda n: (n, 0, 0, 0, 0)),
            pl.BlockSpec((9, Cin, Cm_p), lambda n: (0, 0, 0)),
            pl.BlockSpec((3, Cm_p, Co_p), lambda n: (0, 0, 0)),
        ],
        out_specs=pl.BlockSpec((1, T, HW, Co_p), lambda n: (n, 0, 0, 0)),
        scratch_shapes=[pltpu.VMEM(((T + 2) * HW, Cm_p), jnp.float32)],
        compiler_params=pltpu.CompilerParams(
            dimension_semantics=("parallel",),
            vmem_limit_bytes=64 * 1024 * 1024),
    )(x_cl, ws, wt)

    out = out_p[..., :Cout].reshape(N, T, H, W, Cout)
    return jnp.transpose(out, (0, 4, 1, 2, 3))


def _reference(x, wS, wT):
    """Pure-JAX reference mirroring PyTorch Conv3d semantics (NCDHW)."""
    dn = jax.lax.conv_dimension_numbers(x.shape, wS.shape,
                                        ("NCDHW", "OIDHW", "NCDHW"))
    s = jax.lax.conv_general_dilated(
        x, wS, window_strides=(1, 1, 1),
        padding=((0, 0), (1, 1), (1, 1)), dimension_numbers=dn)
    s = jnp.maximum(s, 0.0)
    dn2 = jax.lax.conv_dimension_numbers(s.shape, wT.shape,
                                         ("NCDHW", "OIDHW", "NCDHW"))
    t = jax.lax.conv_general_dilated(
        s, wT, window_strides=(1, 1, 1),
        padding=((1, 1), (0, 0), (0, 0)), dimension_numbers=dn2)
    return t


if __name__ == "__main__":
    key = jax.random.PRNGKey(0)
    N, Cin, Cout, T, H, W = 2, 4, 8, 4, 8, 8
    Cmid = (Cin + Cout) // 2

    k1, k2, k3 = jax.random.split(key, 3)
    x = jax.random.normal(k1, (N, Cin, T, H, W), jnp.float32)
    # deterministic "kaiming-ish" init consistent with nn.Conv3d shapes
    wS = jax.random.normal(k2, (Cmid, Cin, 1, 3, 3), jnp.float32) / math.sqrt(Cin * 9)
    wT = jax.random.normal(k3, (Cout, Cmid, 3, 1, 1), jnp.float32) / math.sqrt(Cmid * 3)

    out = jax.jit(p3d_conv_a)(x, wS, wT)
    out = jax.block_until_ready(out)

    ref = jax.block_until_ready(_reference(x, wS, wT))
    assert out.shape == (N, Cout, T, H, W), out.shape
    assert jnp.allclose(out, ref, atol=1e-4, rtol=1e-4), \
        float(jnp.max(jnp.abs(out - ref)))

    print("KERNEL_OK")
</pallas_src>

<mosaic_0001>
module attributes {stable_mosaic.version = 11 : i64} {
  func.func @_p3d_fused_kernel(%arg0: i32, %arg1: memref<1x4x10x10x4xf32, #tpu.memory_space<vmem>>, %arg2: memref<9x4x128xf32, #tpu.memory_space<vmem>>, %arg3: memref<3x128x128xf32, #tpu.memory_space<vmem>>, %arg4: memref<1x4x64x128xf32, #tpu.memory_space<vmem>>, %arg5: memref<384x128xf32, #tpu.memory_space<vmem>>) attributes {dimension_semantics = [#tpu.dimension_semantics<parallel>], iteration_bounds = array<i64: 2>, scalar_prefetch = 0 : i64, scratch_operands = 1 : i64, tpu.core_type = #tpu.core_type<tc>, window_params = [{transform_indices = @transform_0, window_bounds = array<i64: 1, 4, 10, 10, 4>}, {pipeline_mode = #tpu.pipeline_mode<synchronous>, transform_indices = @transform_1, window_bounds = array<i64: 9, 4, 128>}, {pipeline_mode = #tpu.pipeline_mode<synchronous>, transform_indices = @transform_2, window_bounds = array<i64: 3, 128, 128>}, {transform_indices = @transform_3, window_bounds = array<i64: 1, 4, 64, 128>}]} {
    %c0 = arith.constant 0 : index
    %c0_0 = arith.constant 0 : index
    %c0_1 = arith.constant 0 : index
    %c0_2 = arith.constant 0 : index
    %c0_3 = arith.constant 0 : index
    %0 = vector.load %arg1[%c0, %c0_0, %c0_1, %c0_2, %c0_3] : memref<1x4x10x10x4xf32, #tpu.memory_space<vmem>>, vector<1x4x10x10x4xf32>
    %1 = vector.shape_cast %0 : vector<1x4x10x10x4xf32> to vector<4x10x10x4xf32>
    %cst = arith.constant 0.000000e+00 : f32
    %2 = vector.broadcast %cst : f32 to vector<256x128xf32>
    %3 = vector.extract_strided_slice %1 {offsets = [0, 0, 0, 0], sizes = [4, 8, 8, 4], strides = [1, 1, 1, 1]} : vector<4x10x10x4xf32> to vector<4x8x8x4xf32>
    %4 = vector.shape_cast %3 : vector<4x8x8x4xf32> to vector<256x4xf32>
    %c0_4 = arith.constant 0 : index
    %c0_5 = arith.constant 0 : index
    %c0_6 = arith.constant 0 : index
    %5 = vector.load %arg2[%c0_4, %c0_5, %c0_6] : memref<9x4x128xf32, #tpu.memory_space<vmem>>, vector<1x4x128xf32>
    %6 = vector.shape_cast %5 : vector<1x4x128xf32> to vector<4x128xf32>
    %cst_7 = arith.constant dense<0.000000e+00> : vector<256x128xf32>
    %7 = tpu.matmul %4, %6, %cst_7 {dimension_numbers = #tpu.dot_dimension_numbers<[1], [0], [0], [1], [0, 0, 1, 1], [], []>} : vector<256x4xf32>, vector<4x128xf32>, vector<256x128xf32> -> vector<256x128xf32>
    %8 = arith.addf %2, %7 : vector<256x128xf32>
    %9 = vector.extract_strided_slice %1 {offsets = [0, 0, 1, 0], sizes = [4, 8, 8, 4], strides = [1, 1, 1, 1]} : vector<4x10x10x4xf32> to vector<4x8x8x4xf32>
    %10 = vector.shape_cast %9 : vector<4x8x8x4xf32> to vector<256x4xf32>
    %c1 = arith.constant 1 : index
    %c0_8 = arith.constant 0 : index
    %c0_9 = arith.constant 0 : index
    %11 = vector.load %arg2[%c1, %c0_8, %c0_9] : memref<9x4x128xf32, #tpu.memory_space<vmem>>, vector<1x4x128xf32>
    %12 = vector.shape_cast %11 : vector<1x4x128xf32> to vector<4x128xf32>
    %cst_10 = arith.constant dense<0.000000e+00> : vector<256x128xf32>
    %13 = tpu.matmul %10, %12, %cst_10 {dimension_numbers = #tpu.dot_dimension_numbers<[1], [0], [0], [1], [0, 0, 1, 1], [], []>} : vector<256x4xf32>, vector<4x128xf32>, vector<256x128xf32> -> vector<256x128xf32>
    %14 = arith.addf %8, %13 : vector<256x128xf32>
    %15 = vector.extract_strided_slice %1 {offsets = [0, 0, 2, 0], sizes = [4, 8, 8, 4], strides = [1, 1, 1, 1]} : vector<4x10x10x4xf32> to vector<4x8x8x4xf32>
    %16 = vector.shape_cast %15 : vector<4x8x8x4xf32> to vector<256x4xf32>
    %c2 = arith.constant 2 : index
    %c0_11 = arith.constant 0 : index
    %c0_12 = arith.constant 0 : index
    %17 = vector.load %arg2[%c2, %c0_11, %c0_12] : memref<9x4x128xf32, #tpu.memory_space<vmem>>, vector<1x4x128xf32>
    %18 = vector.shape_cast %17 : vector<1x4x128xf32> to vector<4x128xf32>
    %cst_13 = arith.constant dense<0.000000e+00> : vector<256x128xf32>
    %19 = tpu.matmul %16, %18, %cst_13 {dimension_numbers = #tpu.dot_dimension_numbers<[1], [0], [0], [1], [0, 0, 1, 1], [], []>} : vector<256x4xf32>, vector<4x128xf32>, vector<256x128xf32> -> vector<256x128xf32>
    %20 = arith.addf %14, %19 : vector<256x128xf32>
    %21 = vector.extract_strided_slice %1 {offsets = [0, 1, 0, 0], sizes = [4, 8, 8, 4], strides = [1, 1, 1, 1]} : vector<4x10x10x4xf32> to vector<4x8x8x4xf32>
    %22 = vector.shape_cast %21 : vector<4x8x8x4xf32> to vector<256x4xf32>
    %c3 = arith.constant 3 : index
    %c0_14 = arith.constant 0 : index
    %c0_15 = arith.constant 0 : index
    %23 = vector.load %arg2[%c3, %c0_14, %c0_15] : memref<9x4x128xf32, #tpu.memory_space<vmem>>, vector<1x4x128xf32>
    %24 = vector.shape_cast %23 : vector<1x4x128xf32> to vector<4x128xf32>
    %cst_16 = arith.constant dense<0.000000e+00> : vector<256x128xf32>
    %25 = tpu.matmul %22, %24, %cst_16 {dimension_numbers = #tpu.dot_dimension_numbers<[1], [0], [0], [1], [0, 0, 1, 1], [], []>} : vector<256x4xf32>, vector<4x128xf32>, vector<256x128xf32> -> vector<256x128xf32>
    %26 = arith.addf %20, %25 : vector<256x128xf32>
    %27 = vector.extract_strided_slice %1 {offsets = [0, 1, 1, 0], sizes = [4, 8, 8, 4], strides = [1, 1, 1, 1]} : vector<4x10x10x4xf32> to vector<4x8x8x4xf32>
    %28 = vector.shape_cast %27 : vector<4x8x8x4xf32> to vector<256x4xf32>
    %c4 = arith.constant 4 : index
    %c0_17 = arith.constant 0 : index
    %c0_18 = arith.constant 0 : index
    %29 = vector.load %arg2[%c4, %c0_17, %c0_18] : memref<9x4x128xf32, #tpu.memory_space<vmem>>, vector<1x4x128xf32>
    %30 = vector.shape_cast %29 : vector<1x4x128xf32> to vector<4x128xf32>
    %cst_19 = arith.constant dense<0.000000e+00> : vector<256x128xf32>
    %31 = tpu.matmul %28, %30, %cst_19 {dimension_numbers = #tpu.dot_dimension_numbers<[1], [0], [0], [1], [0, 0, 1, 1], [], []>} : vector<256x4xf32>, vector<4x128xf32>, vector<256x128xf32> -> vector<256x128xf32>
    %32 = arith.addf %26, %31 : vector<256x128xf32>
    %33 = vector.extract_strided_slice %1 {offsets = [0, 1, 2, 0], sizes = [4, 8, 8, 4], strides = [1, 1, 1, 1]} : vector<4x10x10x4xf32> to vector<4x8x8x4xf32>
    %34 = vector.shape_cast %33 : vector<4x8x8x4xf32> to vector<256x4xf32>
    %c5 = arith.constant 5 : index
    %c0_20 = arith.constant 0 : index
    %c0_21 = arith.constant 0 : index
    %35 = vector.load %arg2[%c5, %c0_20, %c0_21] : memref<9x4x128xf32, #tpu.memory_space<vmem>>, vector<1x4x128xf32>
    %36 = vector.shape_cast %35 : vector<1x4x128xf32> to vector<4x128xf32>
    %cst_22 = arith.constant dense<0.000000e+00> : vector<256x128xf32>
    %37 = tpu.matmul %34, %36, %cst_22 {dimension_numbers = #tpu.dot_dimension_numbers<[1], [0], [0], [1], [0, 0, 1, 1], [], []>} : vector<256x4xf32>, vector<4x128xf32>, vector<256x128xf32> -> vector<256x128xf32>
    %38 = arith.addf %32, %37 : vector<256x128xf32>
    %39 = vector.extract_strided_slice %1 {offsets = [0, 2, 0, 0], sizes = [4, 8, 8, 4], strides = [1, 1, 1, 1]} : vector<4x10x10x4xf32> to vector<4x8x8x4xf32>
    %40 = vector.shape_cast %39 : vector<4x8x8x4xf32> to vector<256x4xf32>
    %c6 = arith.constant 6 : index
    %c0_23 = arith.constant 0 : index
    %c0_24 = arith.constant 0 : index
    %41 = vector.load %arg2[%c6, %c0_23, %c0_24] : memref<9x4x128xf32, #tpu.memory_space<vmem>>, vector<1x4x128xf32>
    %42 = vector.shape_cast %41 : vector<1x4x128xf32> to vector<4x128xf32>
    %cst_25 = arith.constant dense<0.000000e+00> : vector<256x128xf32>
    %43 = tpu.matmul %40, %42, %cst_25 {dimension_numbers = #tpu.dot_dimension_numbers<[1], [0], [0], [1], [0, 0, 1, 1], [], []>} : vector<256x4xf32>, vector<4x128xf32>, vector<256x128xf32> -> vector<256x128xf32>
    %44 = arith.addf %38, %43 : vector<256x128xf32>
    %45 = vector.extract_strided_slice %1 {offsets = [0, 2, 1, 0], sizes = [4, 8, 8, 4], strides = [1, 1, 1, 1]} : vector<4x10x10x4xf32> to vector<4x8x8x4xf32>
    %46 = vector.shape_cast %45 : vector<4x8x8x4xf32> to vector<256x4xf32>
    %c7 = arith.constant 7 : index
    %c0_26 = arith.constant 0 : index
    %c0_27 = arith.constant 0 : index
    %47 = vector.load %arg2[%c7, %c0_26, %c0_27] : memref<9x4x128xf32, #tpu.memory_space<vmem>>, vector<1x4x128xf32>
    %48 = vector.shape_cast %47 : vector<1x4x128xf32> to vector<4x128xf32>
    %cst_28 = arith.constant dense<0.000000e+00> : vector<256x128xf32>
    %49 = tpu.matmul %46, %48, %cst_28 {dimension_numbers = #tpu.dot_dimension_numbers<[1], [0], [0], [1], [0, 0, 1, 1], [], []>} : vector<256x4xf32>, vector<4x128xf32>, vector<256x128xf32> -> vector<256x128xf32>
    %50 = arith.addf %44, %49 : vector<256x128xf32>
    %51 = vector.extract_strided_slice %1 {offsets = [0, 2, 2, 0], sizes = [4, 8, 8, 4], strides = [1, 1, 1, 1]} : vector<4x10x10x4xf32> to vector<4x8x8x4xf32>
    %52 = vector.shape_cast %51 : vector<4x8x8x4xf32> to vector<256x4xf32>
    %c8 = arith.constant 8 : index
    %c0_29 = arith.constant 0 : index
    %c0_30 = arith.constant 0 : index
    %53 = vector.load %arg2[%c8, %c0_29, %c0_30] : memref<9x4x128xf32, #tpu.memory_space<vmem>>, vector<1x4x128xf32>
    %54 = vector.shape_cast %53 : vector<1x4x128xf32> to vector<4x128xf32>
    %cst_31 = arith.constant dense<0.000000e+00> : vector<256x128xf32>
    %55 = tpu.matmul %52, %54, %cst_31 {dimension_numbers = #tpu.dot_dimension_numbers<[1], [0], [0], [1], [0, 0, 1, 1], [], []>} : vector<256x4xf32>, vector<4x128xf32>, vector<256x128xf32> -> vector<256x128xf32>
    %56 = arith.addf %50, %55 : vector<256x128xf32>
    %cst_32 = arith.constant 0.000000e+00 : f32
    %57 = vector.broadcast %cst_32 : f32 to vector<256x128xf32>
    %58 = arith.maximumf %56, %57 : vector<256x128xf32>
    %cst_33 = arith.constant 0.000000e+00 : f32
    %59 = vector.broadcast %cst_33 : f32 to vector<64x128xf32>
    %c0_34 = arith.constant 0 : index
    %c0_35 = arith.constant 0 : index
    %60 = vector.load %arg5[%c0_34, %c0_35] : memref<384x128xf32, #tpu.memory_space<vmem>>, vector<64x128xf32>
    tpu.vector_store %arg5[%c0_34, %c0_35], %59 {strides = array<i32>} : memref<384x128xf32, #tpu.memory_space<vmem>>, vector<64x128xf32>,
    %c320 = arith.constant 320 : index
    %c0_36 = arith.constant 0 : index
    %61 = vector.load %arg5[%c320, %c0_36] : memref<384x128xf32, #tpu.memory_space<vmem>>, vector<64x128xf32>
    tpu.vector_store %arg5[%c320, %c0_36], %59 {strides = array<i32>} : memref<384x128xf32, #tpu.memory_space<vmem>>, vector<64x128xf32>,
    %c64 = arith.constant 64 : index
    %c0_37 = arith.constant 0 : index
    %62 = vector.load %arg5[%c64, %c0_37] : memref<384x128xf32, #tpu.memory_space<vmem>>, vector<256x128xf32>
    tpu.vector_store %arg5[%c64, %c0_37], %58 {strides = array<i32>} : memref<384x128xf32, #tpu.memory_space<vmem>>, vector<256x128xf32>,
    %c1_38 = arith.constant 1 : index
    %c0_39 = arith.constant 0 : index
    %c0_40 = arith.constant 0 : index
    %63 = vector.load %arg3[%c1_38, %c0_39, %c0_40] : memref<3x128x128xf32, #tpu.memory_space<vmem>>, vector<1x128x128xf32>
    %64 = vector.shape_cast %63 : vector<1x128x128xf32> to vector<128x128xf32>
    %cst_41 = arith.constant dense<0.000000e+00> : vector<256x128xf32>
    %65 = tpu.matmul %58, %64, %cst_41 {dimension_numbers = #tpu.dot_dimension_numbers<[1], [0], [0], [1], [0, 0, 1, 1], [], []>} : vector<256x128xf32>, vector<128x128xf32>, vector<256x128xf32> -> vector<256x128xf32>
    %c0_42 = arith.constant 0 : index
    %c0_43 = arith.constant 0 : index
    %66 = vector.load %arg5[%c0_42, %c0_43] : memref<384x128xf32, #tpu.memory_space<vmem>>, vector<256x128xf32>
    %c0_44 = arith.constant 0 : index
    %c0_45 = arith.constant 0 : index
    %c0_46 = arith.constant 0 : index
    %67 = vector.load %arg3[%c0_44, %c0_45, %c0_46] : memref<3x128x128xf32, #tpu.memory_space<vmem>>, vector<1x128x128xf32>
    %68 = vector.shape_cast %67 : vector<1x128x128xf32> to vector<128x128xf32>
    %cst_47 = arith.constant dense<0.000000e+00> : vector<256x128xf32>
    %69 = tpu.matmul %66, %68, %cst_47 {dimension_numbers = #tpu.dot_dimension_numbers<[1], [0], [0], [1], [0, 0, 1, 1], [], []>} : vector<256x128xf32>, vector<128x128xf32>, vector<256x128xf32> -> vector<256x128xf32>
    %70 = arith.addf %65, %69 : vector<256x128xf32>
    %c128 = arith.constant 128 : index
    %c0_48 = arith.constant 0 : index
    %71 = vector.load %arg5[%c128, %c0_48] : memref<384x128xf32, #tpu.memory_space<vmem>>, vector<256x128xf32>
    %c2_49 = arith.constant 2 : index
    %c0_50 = arith.constant 0 : index
    %c0_51 = arith.constant 0 : index
    %72 = vector.load %arg3[%c2_49, %c0_50, %c0_51] : memref<3x128x128xf32, #tpu.memory_space<vmem>>, vector<1x128x128xf32>
    %73 = vector.shape_cast %72 : vector<1x128x128xf32> to vector<128x128xf32>
    %cst_52 = arith.constant dense<0.000000e+00> : vector<256x128xf32>
    %74 = tpu.matmul %71, %73, %cst_52 {dimension_numbers = #tpu.dot_dimension_numbers<[1], [0], [0], [1], [0, 0, 1, 1], [], []>} : vector<256x128xf32>, vector<128x128xf32>, vector<256x128xf32> -> vector<256x128xf32>
    %75 = arith.addf %70, %74 : vector<256x128xf32>
    %76 = vector.shape_cast %75 : vector<256x128xf32> to vector<4x64x128xf32>
    %c0_53 = arith.constant 0 : index
    %c0_54 = arith.constant 0 : index
    %c0_55 = arith.constant 0 : index
    %c0_56 = arith.constant 0 : index
    %77 = vector.load %arg4[%c0_53, %c0_54, %c0_55, %c0_56] : memref<1x4x64x128xf32, #tpu.memory_space<vmem>>, vector<1x4x64x128xf32>
    %78 = vector.shape_cast %77 : vector<1x4x64x128xf32> to vector<4x64x128xf32>
    %79 = vector.shape_cast %76 : vector<4x64x128xf32> to vector<1x4x64x128xf32>
    tpu.vector_store %arg4[%c0_53, %c0_54, %c0_55, %c0_56], %79 {strides = array<i32>} : memref<1x4x64x128xf32, #tpu.memory_space<vmem>>, vector<1x4x64x128xf32>,
    return
  }
  func.func @transform_0(%arg0: i32) -> (i32, i32, i32, i32, i32) {
    %c0_i32 = arith.constant 0 : i32
    %c0_i32_0 = arith.constant 0 : i32
    %c0_i32_1 = arith.constant 0 : i32
    %c0_i32_2 = arith.constant 0 : i32
    %c0_i32_3 = arith.constant 0 : i32
    return %arg0, %c0_i32, %c0_i32_0, %c0_i32_1, %c0_i32_2 : i32, i32, i32, i32, i32
  }
  func.func @transform_1(%arg0: i32) -> (i32, i32, i32) {
    %c0_i32 = arith.constant 0 : i32
    %c0_i32_0 = arith.constant 0 : i32
    %c0_i32_1 = arith.constant 0 : i32
    %c0_i32_2 = arith.constant 0 : i32
    return %c0_i32, %c0_i32_0, %c0_i32_1 : i32, i32, i32
  }
  func.func @transform_2(%arg0: i32) -> (i32, i32, i32) {
    %c0_i32 = arith.constant 0 : i32
    %c0_i32_0 = arith.constant 0 : i32
    %c0_i32_1 = arith.constant 0 : i32
    %c0_i32_2 = arith.constant 0 : i32
    return %c0_i32, %c0_i32_0, %c0_i32_1 : i32, i32, i32
  }
  func.func @transform_3(%arg0: i32) -> (i32, i32, i32, i32) {
    %c0_i32 = arith.constant 0 : i32
    %c0_i32_0 = arith.constant 0 : i32
    %c0_i32_1 = arith.constant 0 : i32
    %c0_i32_2 = arith.constant 0 : i32
    return %arg0, %c0_i32, %c0_i32_0, %c0_i32_1 : i32, i32, i32, i32
  }
}

</mosaic_0001>

<bundles_post_ra>
// kernel: p3d_conv_a.1
= control target key start
LH: loop header
LB: loop body
LE: loop exit
PB: predicated region body
PF: predicated region fallthrough
CT: control target
= control target key end

     0   :  { %s3139_s12 = smov 0   ;;  %s4821_s0 = inlined_call_operand.vmem [shape: f32[2,4,10,10,4], index: 0, kind: input, shape index: {}]   ;;  %s4822_s1 = inlined_call_operand.vmem [shape: f32[9,4,128], index: 1, kind: input, shape index: {}]   ;;  %s4823_s2 = inlined_call_operand.vmem [shape: f32[3,128,128], index: 2, kind: input, shape index: {}]   ;;  %s4824_s3 = inlined_call_operand.vmem [shape: f32[2,4,64,128], index: 3, kind: output, shape index: {}]  }
   0x1 LB: > { %s2752_s13 = sadd.s32 4294967295, %s3116_s12   ;;  %p2756_p0 = scmp.ge.s32.totalorder %s3116_s12, 1  ;;  %s3116_s12 = sphi %s3139_s12, %s13_s12  }
   0x2   : > { %p137_p1 = scmp.lt.s32.totalorder %s3116_s12, 3 }
   0x4   : > { %p138_p2 = pnand %p2756_p0, %p137_p1 }
   0x6   : > { %141 = sbr.rel (%p138_p2) target bundleno = 1111 (0x457), region = 32 }
   0xb   : > { %v2760_v0 = vld [vmem:[%s4822_s1 + $0x4] sm:$0xf]  ;;  %vm480_vm0 = vcmask 1043456   ;;  %v251_v1 = vld [vmem:[%s4822_s1] sm:$0xf]  ;;  %p161_p3 = scmp.lt.s32.totalorder %s2752_s13, 1 }
   0xc   : > { %2761 = vmatpush.msk.msra.mxu0 %vm480_vm0, %v2760_v0  ;;  %2794 = vmatpush.msk.msra.mxu1 %vm480_vm0, %v251_v1  ;;  %v2827_v2 = vld [vmem:[%s4822_s1 + $0x8] sm:$0xf]  ;;  %v2895_v3 = vld [vmem:[%s4822_s1 + $0x10] sm:$0xf]  ;;  %v2861_v4 = vld [vmem:[%s4822_s1 + $0xc] sm:$0xf] }
   0xd   : > { %2828 = vmatpush.msk.msra.mxu2 %vm480_vm0, %v2827_v2  ;;  %s5071_s13 = smov (!%p161_p3, %s2752_s13), 1  ;;  %2862 = vmatpush.msk.msra.mxu3 %vm480_vm0, %v2861_v4  ;;  %vm415_vm1 = vcmask 31744   ;;  %vm316_vm2 = vcmask 1046528   ;;  %vm777_vm3 = vcmask 1045504  }
   0xe   : > { %2896 = vmatpush.msk.msrb.mxu0 %vm480_vm0, %v2895_v3  ;;  %s3100_s24 = smul.u32 640, %s5071_s13  ;;  %s3099_s6 = sshll.u32 %s5071_s13, 8 }
   0xf   : > { %s4724_s9 = scalar_lea.vmem %s4824_s3, %s3099_s6 }
  0x10   : > { %s3173_s27 = scalar_lea.vmem %s4821_s0, %s3100_s24 }
  0x11   : > { %v171_v5 = vld [vmem:[%s3173_s27] sm:$0xff]  ;;  %v172_v6 = vld [vmem:[%s3173_s27 + $0x8] sm:$0x3]  ;;  %v173_v7 = vld [vmem:[%s3173_s27 + $0x10] sm:$0xff] }
  0x12   : > { %v317_v8 = vrot.slane %v171_v5, 1  ;;  %v318_v9 = vrot.slane %v172_v6, 1  ;;  %2795 = vmatmul.msk.f32.vlgmr.msra.gmra.mxu1 %vm415_vm1, %v171_v5  ;;  %v778_v10 = vrot.slane %v171_v5, 2  ;;  %v779_v11 = vrot.slane %v172_v6, 2  ;;  %2863 = vmatmul.msk.f32.vlgmr.msra.gmra.mxu3 %vm415_vm1, %v173_v7  ;;  %v174_v12 = vld [vmem:[%s3173_s27 + $0x18] sm:$0x3] }
  0x13   : > { %v320_v15 = vrot.slane %v173_v7, 1  ;;  %v321_v16 = vrot.slane %v174_v12, 1  ;;  %v781_v17 = vrot.slane %v173_v7, 2  ;;  %v782_v18 = vrot.slane %v174_v12, 2  ;;  %v3186_v19 = vld [vmem:[%s3173_s27 + $0x20] sm:$0xff]  ;;  %v3205_v27 = vld [vmem:[%s3173_s27 + $0x30] sm:$0xff] }
  0x14   : > { %v319_v13 = vsel %vm316_vm2, %v317_v8, %v318_v9  ;;  %v780_v14 = vsel %vm777_vm3, %v778_v10, %v779_v11  ;;  %v176_v22 = vld [vmem:[%s3173_s27 + $0x28] sm:$0x3]  ;;  %v323_v23 = vrot.slane %v3186_v19, 1  ;;  %v784_v25 = vrot.slane %v3186_v19, 2  ;;  %v178_v30 = vld [vmem:[%s3173_s27 + $0x38] sm:$0x3] }
  0x15   : > { %2762 = vmatmul.msk.f32.vlgmr.msra.gmra.mxu0 %vm415_vm1, %v319_v13  ;;  %2829 = vmatmul.msk.f32.vlgmr.msra.gmra.mxu2 %vm415_vm1, %v780_v14  ;;  %v3189_v20 = vsel %vm316_vm2, %v320_v15, %v321_v16  ;;  %v3193_v21 = vsel %vm777_vm3, %v781_v17, %v782_v18  ;;  %v324_v24 = vrot.slane %v176_v22, 1  ;;  %v785_v26 = vrot.slane %v176_v22, 2  ;;  %v3225_v35 = vld [vmem:[%s3173_s27 + $0x40] sm:$0xff]  ;;  %v180_v38 = vld [vmem:[%s3173_s27 + $0x48] sm:$0x3]  ;;  %v3245_v43 = vld [vmem:[%s3173_s27 + $0x50] sm:$0xff] }
  0x16   : > { %v326_v31 = vrot.slane %v3205_v27, 1  ;;  %v327_v32 = vrot.slane %v178_v30, 1  ;;  %v787_v33 = vrot.slane %v3205_v27, 2  ;;  %v788_v34 = vrot.slane %v178_v30, 2  ;;  %v182_v46 = vld [vmem:[%s3173_s27 + $0x58] sm:$0x3] }
  0x17   : > { %v3208_v28 = vsel %vm316_vm2, %v323_v23, %v324_v24  ;;  %v3213_v29 = vsel %vm777_vm3, %v784_v25, %v785_v26  ;;  %v329_v39 = vrot.slane %v3225_v35, 1  ;;  %v330_v40 = vrot.slane %v180_v38, 1  ;;  %v3265_v51 = vld [vmem:[%s3173_s27 + $0x60] sm:$0xff]  ;;  %v184_v54 = vld [vmem:[%s3173_s27 + $0x68] sm:$0x3]  ;;  %v3285_v59 = vld [vmem:[%s3173_s27 + $0x70] sm:$0xff] }
  0x18   : > { %v3228_v36 = vsel %vm316_vm2, %v326_v31, %v327_v32  ;;  %v3233_v37 = vsel %vm777_vm3, %v787_v33, %v788_v34  ;;  %v790_v41 = vrot.slane %v3225_v35, 2  ;;  %v791_v42 = vrot.slane %v180_v38, 2  ;;  %v186_v62 = vld [vmem:[%s3173_s27 + $0x78] sm:$0x3]  ;;  %v3305_v3 = vld [vmem:[%s3173_s27 + $0x80] sm:$0xff]  ;;  %v193_v12 = vld [vmem:[%s3173_s27 + $0xb0] sm:$0xff] }
  0x19   : > { %v3248_v44 = vsel %vm316_vm2, %v329_v39, %v330_v40  ;;  %v332_v47 = vrot.slane %v3245_v43, 1  ;;  %v333_v48 = vrot.slane %v182_v46, 1  ;;  %v793_v49 = vrot.slane %v3245_v43, 2  ;;  %v191_v6 = vld [vmem:[%s3173_s27 + $0xa0] sm:$0xff]  ;;  %v194_v15 = vld [vmem:[%s3173_s27 + $0xb8] sm:$0x3] }
  0x1a   : > { %2796 = vmatmul.msk.f32.gmra.mxu1 %vm415_vm1, %v173_v7  ;;  %2864 = vmatmul.msk.f32.gmra.mxu3 %vm415_vm1, %v3186_v19  ;;  %v3253_v45 = vsel %vm777_vm3, %v790_v41, %v791_v42  ;;  %v794_v50 = vrot.slane %v182_v46, 2  ;;  %v335_v55 = vrot.slane %v3265_v51, 1  ;;  %v336_v56 = vrot.slane %v184_v54, 1  ;;  %v192_v7 = vld [vmem:[%s3173_s27 + $0xa8] sm:$0x3]  ;;  %v3332_v23 = vld [vmem:[%s3173_s27 + $0xc0] sm:$0xff] }
  0x1b   : > { %v3268_v52 = vsel %vm316_vm2, %v332_v47, %v333_v48  ;;  %v796_v57 = vrot.slane %v3265_v51, 2  ;;  %v797_v58 = vrot.slane %v184_v54, 2  ;;  %v338_v63 = vrot.slane %v3285_v59, 1  ;;  %v196_v26 = vld [vmem:[%s3173_s27 + $0xc8] sm:$0x3]  ;;  %v3351_v34 = vld [vmem:[%s3173_s27 + $0xd0] sm:$0xff] }
  0x1c   : > { %v3273_v53 = vsel %vm777_vm3, %v793_v49, %v794_v50  ;;  %v3288_v60 = vsel %vm316_vm2, %v335_v55, %v336_v56  ;;  %v339_v0 = vrot.slane %v186_v62, 1  ;;  %v799_v1 = vrot.slane %v3285_v59, 2  ;;  %v198_v40 = vld [vmem:[%s3173_s27 + $0xd8] sm:$0x3]  ;;  %v3371_v48 = vld [vmem:[%s3173_s27 + $0xe0] sm:$0xff] }
  0x1d   : > { %2763 = vmatmul.msk.f32.gmra.mxu0 %vm415_vm1, %v3189_v20  ;;  %2830 = vmatmul.msk.f32.gmra.mxu2 %vm415_vm1, %v3193_v21  ;;  %v3293_v61 = vsel %vm777_vm3, %v796_v57, %v797_v58  ;;  %v800_v2 = vrot.slane %v186_v62, 2  ;;  %v341_v8 = vrot.slane %v191_v6, 1  ;;  %v342_v9 = vrot.slane %v192_v7, 1  ;;  %v200_v54 = vld [vmem:[%s3173_s27 + $0xe8] sm:$0x3]  ;;  %v3391_v62 = vld [vmem:[%s3173_s27 + $0xf0] sm:$0xff] }
  0x1e   : > { %v3308_v4 = vsel %vm316_vm2, %v338_v63, %v339_v0  ;;  %v802_v10 = vrot.slane %v191_v6, 2  ;;  %v803_v11 = vrot.slane %v192_v7, 2  ;;  %v344_v16 = vrot.slane %v193_v12, 1 }
  0x1f   : > { %v3313_v5 = vsel %vm777_vm3, %v799_v1, %v800_v2  ;;  %v343_v13 = vsel %vm316_vm2, %v341_v8, %v342_v9  ;;  %v345_v17 = vrot.slane %v194_v15, 1  ;;  %v805_v18 = vrot.slane %v193_v12, 2  ;;  %v202_v1 = vld [vmem:[%s3173_s27 + $0xf8] sm:$0x3]  ;;  %v3411_v9 = vld [vmem:[%s3173_s27 + $0x100] sm:$0xff] }
  0x20   : > { %v804_v14 = vsel %vm777_vm3, %v802_v10, %v803_v11  ;;  %v806_v22 = vrot.slane %v194_v15, 2  ;;  %v347_v30 = vrot.slane %v3332_v23, 1  ;;  %v348_v31 = vrot.slane %v196_v26, 1 }
  0x21   : > { %v3335_v24 = vsel %vm316_vm2, %v344_v16, %v345_v17  ;;  %v808_v32 = vrot.slane %v3332_v23, 2  ;;  %v809_v33 = vrot.slane %v196_v26, 2  ;;  %v350_v41 = vrot.slane %v3351_v34, 1  ;;  %v3431_v17 = vld [vmem:[%s3173_s27 + $0x110] sm:$0xff]  ;;  %v206_v26 = vld [vmem:[%s3173_s27 + $0x118] sm:$0x3] }
  0x22   : > { %2797 = vmatmul.msk.f32.gmra.mxu1 %vm415_vm1, %v3186_v19  ;;  %2865 = vmatmul.msk.f32.gmra.mxu3 %vm415_vm1, %v3205_v27  ;;  %v3339_v25 = vsel %vm777_vm3, %v805_v18, %v806_v22  ;;  %v3354_v38 = vsel %vm316_vm2, %v347_v30, %v348_v31  ;;  %v351_v42 = vrot.slane %v198_v40, 1  ;;  %v811_v46 = vrot.slane %v3351_v34, 2 }
  0x23   : > { %v3359_v39 = vsel %vm777_vm3, %v808_v32, %v809_v33  ;;  %v812_v47 = vrot.slane %v198_v40, 2  ;;  %v353_v55 = vrot.slane %v3371_v48, 1  ;;  %v354_v56 = vrot.slane %v200_v54, 1  ;;  %v3451_v40 = vld [vmem:[%s3173_s27 + $0x120] sm:$0xff] }
  0x24   : > { %v3374_v49 = vsel %vm316_vm2, %v350_v41, %v351_v42  ;;  %v814_v57 = vrot.slane %v3371_v48, 2  ;;  %v815_v58 = vrot.slane %v200_v54, 2  ;;  %v356_v2 = vrot.slane %v3391_v62, 1 }
  0x25   : > { %2764 = vmatmul.msk.f32.gmra.mxu0 %vm415_vm1, %v3208_v28  ;;  %2831 = vmatmul.msk.f32.gmra.mxu2 %vm415_vm1, %v3213_v29  ;;  %v3379_v50 = vsel %vm777_vm3, %v811_v46, %v812_v47  ;;  %v3394_v63 = vsel %vm316_vm2, %v353_v55, %v354_v56  ;;  %v817_v7 = vrot.slane %v3391_v62, 2  ;;  %v818_v8 = vrot.slane %v202_v1, 2  ;;  %v211_v46 = vld [vmem:[%s3173_s27 + $0x140] sm:$0xff]  ;;  %v212_v47 = vld [vmem:[%s3173_s27 + $0x148] sm:$0x3] }
  0x26   : > { %v3399_v0 = vsel %vm777_vm3, %v814_v57, %v815_v58  ;;  %v820_v15 = vrot.slane %v3411_v9, 2  ;;  %v362_v30 = vrot.slane %v3431_v17, 1  ;;  %v363_v31 = vrot.slane %v206_v26, 1 }
  0x27   : > { %v3419_v11 = vsel %vm777_vm3, %v817_v7, %v818_v8  ;;  %v823_v32 = vrot.slane %v3431_v17, 2  ;;  %v824_v33 = vrot.slane %v206_v26, 2  ;;  %v365_v54 = vrot.slane %v211_v46, 1  ;;  %v214_v8 = vld [vmem:[%s3173_s27 + $0x158] sm:$0x3] }
  0x28   : > { %v3454_v41 = vsel %vm316_vm2, %v362_v30, %v363_v31  ;;  %v366_v55 = vrot.slane %v212_v47, 1  ;;  %v826_v56 = vrot.slane %v211_v46, 2  ;;  %v827_v57 = vrot.slane %v212_v47, 2  ;;  %v3478_v31 = vld [vmem:[%s3173_s27 + $0x160] sm:$0xff] }
  0x29   : > { %v3459_v42 = vsel %vm777_vm3, %v823_v32, %v824_v33  ;;  %4885 = vst [vmem:[#allocation3_spill] sm:$0xff] %v3478_v31 }
  0x2a   : > { %2798 = vmatmul.msk.f32.gmra.mxu1 %vm415_vm1, %v3205_v27  ;;  %2866 = vmatmul.msk.f32.gmra.mxu3 %vm415_vm1, %v3225_v35  ;;  %v828_v7 = vsel %vm777_vm3, %v826_v56, %v827_v57  ;;  %v216_v56 = vld [vmem:[%s3173_s27 + $0x168] sm:$0x3] }
  0x2d   : > { %2765 = vmatmul.msk.f32.gmra.mxu0 %vm415_vm1, %v3228_v36  ;;  %2832 = vmatmul.msk.f32.gmra.mxu2 %vm415_vm1, %v3233_v37 }
  0x32   : > { %2799 = vmatmul.msk.f32.gmra.mxu1 %vm415_vm1, %v3225_v35  ;;  %2867 = vmatmul.msk.f32.gmra.mxu3 %vm415_vm1, %v3245_v43 }
  0x35   : > { %2766 = vmatmul.msk.f32.gmra.mxu0 %vm415_vm1, %v3248_v44  ;;  %2833 = vmatmul.msk.f32.gmra.mxu2 %vm415_vm1, %v3253_v45 }
  0x3a   : > { %2800 = vmatmul.msk.f32.gmra.mxu1 %vm415_vm1, %v3245_v43  ;;  %2868 = vmatmul.msk.f32.gmra.mxu3 %vm415_vm1, %v3265_v51 }
  0x3d   : > { %2767 = vmatmul.msk.f32.gmra.mxu0 %vm415_vm1, %v3268_v52  ;;  %2834 = vmatmul.msk.f32.gmra.mxu2 %vm415_vm1, %v3273_v53 }
  0x42   : > { %2801 = vmatmul.msk.f32.gmra.mxu1 %vm415_vm1, %v3265_v51  ;;  %2869 = vmatmul.msk.f32.gmra.mxu3 %vm415_vm1, %v3285_v59 }
  0x45   : > { %2768 = vmatmul.msk.f32.gmra.mxu0 %vm415_vm1, %v3288_v60  ;;  %2835 = vmatmul.msk.f32.gmra.mxu2 %vm415_vm1, %v3293_v61 }
  0x4a   : > { %2802 = vmatmul.msk.f32.gmra.mxu1 %vm415_vm1, %v3285_v59  ;;  %2870 = vmatmul.msk.f32.gmra.mxu3 %vm415_vm1, %v3305_v3 }
  0x4d   : > { %2769 = vmatmul.msk.f32.gmra.mxu0 %vm415_vm1, %v3308_v4  ;;  %2836 = vmatmul.msk.f32.gmra.mxu2 %vm415_vm1, %v3313_v5 }
  0x52   : > { %2803 = vmatmul.msk.f32.gmra.mxu1 %vm415_vm1, %v191_v6  ;;  %2871 = vmatmul.msk.f32.gmra.mxu3 %vm415_vm1, %v193_v12  ;;  %v357_v6 = vrot.slane %v202_v1, 1  ;;  %v213_v1 = vld [vmem:[%s3173_s27 + $0x150] sm:$0xff] }
  0x54   : > { %v3414_v10 = vsel %vm316_vm2, %v356_v2, %v357_v6  ;;  %v367_v6 = vsel %vm316_vm2, %v365_v54, %v366_v55 }
  0x55   : > { %2770 = vmatmul.msk.f32.gmra.mxu0 %vm415_vm1, %v343_v13  ;;  %2837 = vmatmul.msk.f32.gmra.mxu2 %vm415_vm1, %v804_v14  ;;  %v359_v13 = vrot.slane %v3411_v9, 1 }
  0x5a   : > { %2804 = vmatmul.msk.f32.gmra.mxu1 %vm415_vm1, %v193_v12  ;;  %2872 = vmatmul.msk.f32.gmra.mxu3 %vm415_vm1, %v3332_v23  ;;  %v204_v12 = vld [vmem:[%s3173_s27 + $0x108] sm:$0x3] }
  0x5b   : > { %v360_v14 = vrot.slane %v204_v12, 1  ;;  %v821_v16 = vrot.slane %v204_v12, 2 }
  0x5d   : > { %2771 = vmatmul.msk.f32.gmra.mxu0 %vm415_vm1, %v3335_v24  ;;  %2838 = vmatmul.msk.f32.gmra.mxu2 %vm415_vm1, %v3339_v25  ;;  %v3434_v18 = vsel %vm316_vm2, %v359_v13, %v360_v14  ;;  %v3439_v22 = vsel %vm777_vm3, %v820_v15, %v821_v16  ;;  %v368_v13 = vrot.slane %v213_v1, 1  ;;  %v369_v14 = vrot.slane %v214_v8, 1 }
  0x5e   : > { %v829_v15 = vrot.slane %v213_v1, 2  ;;  %v830_v16 = vrot.slane %v214_v8, 2 }
  0x5f   : > { %v3481_v47 = vsel %vm316_vm2, %v368_v13, %v369_v14  ;;  %v3499_v13 = vld [vmem:[%s3173_s27 + $0x170] sm:$0xff] }
  0x60   : > { %4886 = vst [vmem:[#allocation4_spill] sm:$0xff] %v3481_v47  ;;  %v3485_v54 = vsel %vm777_vm3, %v829_v15, %v830_v16 }
  0x61   : > { %4888 = vst [vmem:[#allocation6_spill] sm:$0xff] %v3499_v13 }
  0x62   : > { %2805 = vmatmul.msk.f32.gmra.mxu1 %vm415_vm1, %v3332_v23  ;;  %2873 = vmatmul.msk.f32.gmra.mxu3 %vm415_vm1, %v3351_v34 }
  0x65   : > { %2772 = vmatmul.msk.f32.gmra.mxu0 %vm415_vm1, %v3354_v38  ;;  %2839 = vmatmul.msk.f32.gmra.mxu2 %vm415_vm1, %v3359_v39 }
  0x6a   : > { %2806 = vmatmul.msk.f32.gmra.mxu1 %vm415_vm1, %v3351_v34  ;;  %2874 = vmatmul.msk.f32.gmra.mxu3 %vm415_vm1, %v3371_v48 }
  0x6d   : > { %2773 = vmatmul.msk.f32.gmra.mxu0 %vm415_vm1, %v3374_v49  ;;  %2840 = vmatmul.msk.f32.gmra.mxu2 %vm415_vm1, %v3379_v50 }
  0x72   : > { %2807 = vmatmul.msk.f32.gmra.mxu1 %vm415_vm1, %v3371_v48  ;;  %2875 = vmatmul.msk.f32.gmra.mxu3 %vm415_vm1, %v3391_v62 }
  0x75   : > { %2774 = vmatmul.msk.f32.gmra.mxu0 %vm415_vm1, %v3394_v63  ;;  %2841 = vmatmul.msk.f32.gmra.mxu2 %vm415_vm1, %v3399_v0 }
  0x7a   : > { %2808 = vmatmul.msk.f32.gmra.mxu1 %vm415_vm1, %v3391_v62  ;;  %2876 = vmatmul.msk.f32.gmra.mxu3 %vm415_vm1, %v3411_v9 }
  0x7d   : > { %2775 = vmatmul.msk.f32.gmra.mxu0 %vm415_vm1, %v3414_v10  ;;  %2842 = vmatmul.msk.f32.gmra.mxu2 %vm415_vm1, %v3419_v11 }
  0x82   : > { %2809 = vmatmul.msk.f32.gmra.mxu1 %vm415_vm1, %v3411_v9  ;;  %2877 = vmatmul.msk.f32.gmra.mxu3 %vm415_vm1, %v3431_v17 }
  0x85   : > { %2776 = vmatmul.msk.f32.gmra.mxu0 %vm415_vm1, %v3434_v18  ;;  %2843 = vmatmul.msk.f32.gmra.mxu2 %vm415_vm1, %v3439_v22 }
  0x8a   : > { %2810 = vmatmul.msk.f32.gmra.mxu1 %vm415_vm1, %v3431_v17  ;;  %2878 = vmatmul.msk.f32.gmra.mxu3 %vm415_vm1, %v3451_v40 }
  0x8d   : > { %2777 = vmatmul.msk.f32.gmra.mxu0 %vm415_vm1, %v3454_v41  ;;  %2844 = vmatmul.msk.f32.gmra.mxu2 %vm415_vm1, %v3459_v42 }
  0x8f   : > { %v681_v58 = vpop.f32.mrf.mxu1 }
  0x92   : > { %v501_v2 = vpop.f32.mrf.mxu0  ;;  %2811 = vmatmul.msk.f32.gmra.mxu1 %vm415_vm1, %v211_v46  ;;  %2879 = vmatmul.msk.f32.gmra.mxu3 %vm415_vm1, %v213_v1 }
  0x93   : > { %v682_v26 = vadd.f32 %v681_v58, %v501_v2  ;;  %v371_v58 = vrot.slane %v3478_v31, 1  ;;  %v832_v2 = vrot.slane %v3478_v31, 2 }
  0x95   : > { %2778 = vmatmul.msk.f32.gmra.mxu0 %vm415_vm1, %v367_v6  ;;  %2845 = vmatmul.msk.f32.gmra.mxu2 %vm415_vm1, %v828_v7  ;;  %v1122_v12 = vpop.f32.mrf.mxu3  ;;  %v833_v6 = vrot.slane %v216_v56, 2 }
  0x97   : > { %v684_v30 = vpop.f32.mrf.mxu1 }
  0x98   : > { %v960_v32 = vpop.f32.mrf.mxu2 }
  0x99   : > { %v1056_v33 = vadd.f32 %v960_v32, %v682_v26  ;;  %v3507_v26 = vsel %vm777_vm3, %v832_v2, %v833_v6  ;;  %v218_v32 = vld [vmem:[%s3173_s27 + $0x178] sm:$0x3] }
  0x9a   : > { %v504_v46 = vpop.f32.mrf.mxu0  ;;  %2812 = vmatmul.msk.f32.gmra.mxu1 %vm415_vm1, %v213_v1  ;;  %2880 = vmatmul.msk.f32.gmra.mxu3 %vm415_vm1, %v3478_v31  ;;  %v372_v1 = vrot.slane %v216_v56, 1  ;;  %4889 = vst [vmem:[#allocation7_spill] sm:$0xff] %v3507_v26  ;;  %v375_v56 = vrot.slane %v218_v32, 1 }
  0x9b   : > { %v3489_v55 = vadd.f32 %v1122_v12, %v1056_v33  ;;  %v685_v7 = vadd.f32 %v684_v30, %v504_v46  ;;  %v374_v46 = vrot.slane %v3499_v13, 1 }
  0x9c   : > { %v3502_v16 = vsel %vm316_vm2, %v371_v58, %v372_v1  ;;  %v835_v58 = vrot.slane %v3499_v13, 2  ;;  %v836_v1 = vrot.slane %v218_v32, 2 }
  0x9d   : > { %4887 = vst [vmem:[#allocation5_spill] sm:$0xff] %v3489_v55  ;;  %2779 = vmatmul.msk.f32.gmra.mxu0 %vm415_vm1, %v3481_v47  ;;  %2846 = vmatmul.msk.f32.gmra.mxu2 %vm415_vm1, %v3485_v54  ;;  %v1125_v57 = vpop.f32.mrf.mxu3  ;;  %v234_v47 = vld [vmem:[%s3173_s27 + $0x1f8] sm:$0x3] }
  0x9f   : > { %v687_v8 = vpop.f32.mrf.mxu1 }
  0xa0   : > { %v963_v12 = vpop.f32.mrf.mxu2 }
  0xa1   : > { %v1057_v14 = vadd.f32 %v963_v12, %v685_v7  ;;  %v3521_v7 = vld [vmem:[%s3173_s27 + $0x180] sm:$0xff] }
  0xa2   : > { %v507_v15 = vpop.f32.mrf.mxu0  ;;  %2813 = vmatmul.msk.f32.gmra.mxu1 %vm415_vm1, %v3478_v31  ;;  %2881 = vmatmul.msk.f32.gmra.mxu3 %vm415_vm1, %v3499_v13  ;;  %4891 = vst [vmem:[#allocation9_spill] sm:$0xff] %v3521_v7 }
  0xa3   : > { %v3511_v30 = vadd.f32 %v1125_v57, %v1057_v14  ;;  %v688_v2 = vadd.f32 %v687_v8, %v507_v15  ;;  %v220_v15 = vld [vmem:[%s3173_s27 + $0x188] sm:$0x3] }
  0xa5   : > { %4890 = vst [vmem:[#allocation8_spill] sm:$0xff] %v3511_v30  ;;  %2780 = vmatmul.msk.f32.gmra.mxu0 %vm415_vm1, %v3502_v16  ;;  %2847 = vmatmul.msk.f32.gmra.mxu2 %vm415_vm1, %v3507_v26  ;;  %v1128_v33 = vpop.f32.mrf.mxu3  ;;  %v3524_v30 = vsel %vm316_vm2, %v374_v46, %v375_v56  ;;  %v3529_v26 = vsel %vm777_vm3, %v835_v58, %v836_v1  ;;  %v377_v46 = vrot.slane %v3521_v7, 1  ;;  %v378_v56 = vrot.slane %v220_v15, 1 }
  0xa6   : > { %4892 = vst [vmem:[#allocation10_spill] sm:$0xff] %v3524_v30  ;;  %v838_v58 = vrot.slane %v3521_v7, 2  ;;  %v839_v1 = vrot.slane %v220_v15, 2 }
  0xa7   : > { %v690_v6 = vpop.f32.mrf.mxu1  ;;  %4893 = vst [vmem:[#allocation11_spill] sm:$0xff] %v3529_v26 }
  0xa8   : > { %v966_v57 = vpop.f32.mrf.mxu2 }
  0xa9   : > { %v1058_v12 = vadd.f32 %v966_v57, %v688_v2 }
  0xaa   : > { %v510_v14 = vpop.f32.mrf.mxu0  ;;  %2814 = vmatmul.msk.f32.gmra.mxu1 %vm415_vm1, %v3499_v13  ;;  %2882 = vmatmul.msk.f32.gmra.mxu3 %vm415_vm1, %v3521_v7  ;;  %v3543_v13 = vld [vmem:[%s3173_s27 + $0x190] sm:$0xff] }
  0xab   : > { %v3533_v8 = vadd.f32 %v1128_v33, %v1058_v12  ;;  %v691_v2 = vadd.f32 %v690_v6, %v510_v14  ;;  %4895 = vst [vmem:[#allocation13_spill] sm:$0xff] %v3543_v13  ;;  %v222_v14 = vld [vmem:[%s3173_s27 + $0x198] sm:$0x3] }
  0xad   : > { %4894 = vst [vmem:[#allocation12_spill] sm:$0xff] %v3533_v8  ;;  %2781 = vmatmul.msk.f32.gmra.mxu0 %vm415_vm1, %v3524_v30  ;;  %2848 = vmatmul.msk.f32.gmra.mxu2 %vm415_vm1, %v3529_v26  ;;  %v1131_v32 = vpop.f32.mrf.mxu3  ;;  %v3546_v30 = vsel %vm316_vm2, %v377_v46, %v378_v56  ;;  %v3551_v26 = vsel %vm777_vm3, %v838_v58, %v839_v1  ;;  %v2963_v46 = vld [vmem:[%s4822_s1 + $0x18] sm:$0xf]  ;;  %v2997_v56 = vld [vmem:[%s4822_s1 + $0x1c] sm:$0xf]  ;;  %v380_v58 = vrot.slane %v3543_v13, 1 }
  0xae   : > { %4896 = vst [vmem:[#allocation14_spill] sm:$0xff] %v3546_v30  ;;  %v841_v1 = vrot.slane %v3543_v13, 2  ;;  %2964 = vmatpush.msk.msrb.mxu2 %vm480_vm0, %v2963_v46  ;;  %2998 = vmatpush.msk.msrb.mxu3 %vm480_vm0, %v2997_v56 }
  0xaf   : > { %v693_v57 = vpop.f32.mrf.mxu1  ;;  %4897 = vst [vmem:[#allocation15_spill] sm:$0xff] %v3551_v26 }
  0xb0   : > { %v969_v33 = vpop.f32.mrf.mxu2 }
  0xb1   : > { %v1059_v12 = vadd.f32 %v969_v33, %v691_v2  ;;  %v842_v2 = vrot.slane %v222_v14, 2 }
  0xb2   : > { %v513_v8 = vpop.f32.mrf.mxu0  ;;  %2815 = vmatmul.msk.f32.gmra.mxu1 %vm415_vm1, %v3521_v7  ;;  %2883 = vmatmul.msk.f32.gmra.mxu3 %vm415_vm1, %v3543_v13 }
  0xb3   : > { %v3555_v6 = vadd.f32 %v1131_v32, %v1059_v12  ;;  %v381_v32 = vrot.slane %v222_v14, 1  ;;  %v694_v33 = vadd.f32 %v693_v57, %v513_v8  ;;  %v3581_v14 = vsel %vm777_vm3, %v841_v1, %v842_v2  ;;  %v224_v57 = vld [vmem:[%s3173_s27 + $0x1a8] sm:$0x3]  ;;  %v3599_v2 = vld [vmem:[%s3173_s27 + $0x1b0] sm:$0xff] }
  0xb4   : > { %4901 = vst [vmem:[#allocation19_spill] sm:$0xff] %v3581_v14 }
  0xb5   : > { %4898 = vst [vmem:[#allocation16_spill] sm:$0xff] %v3555_v6  ;;  %2782 = vmatmul.msk.f32.gmra.mxu0 %vm415_vm1, %v3546_v30  ;;  %2849 = vmatmul.msk.f32.gmra.mxu2 %vm415_vm1, %v3551_v26  ;;  %v1134_v15 = vpop.f32.mrf.mxu3  ;;  %v3573_v6 = vld [vmem:[%s3173_s27 + $0x1a0] sm:$0xff]  ;;  %v3576_v31 = vsel %vm316_vm2, %v380_v58, %v381_v32  ;;  %v384_v58 = vrot.slane %v224_v57, 1 }
  0xb6   : > { %4899 = vst [vmem:[#allocation17_spill] sm:$0xff] %v3573_v6  ;;  %v383_v56 = vrot.slane %v3573_v6, 1 }
  0xb7   : > { %v696_v12 = vpop.f32.mrf.mxu1  ;;  %4900 = vst [vmem:[#allocation18_spill] sm:$0xff] %v3576_v31 }
  0xb8   : > { %v972_v26 = vpop.f32.mrf.mxu2  ;;  %4903 = vst [vmem:[#allocation21_spill] sm:$0xff] %v3599_v2 }
  0xb9   : > { %v1060_v7 = vadd.f32 %v972_v26, %v694_v33  ;;  %v2929_v26 = vld [vmem:[%s4822_s1 + $0x14] sm:$0xf] }
  0xba   : > { %v516_v30 = vpop.f32.mrf.mxu0  ;;  %2816 = vmatmul.msk.f32.gmra.mxu1 %vm415_vm1, %v3543_v13  ;;  %2884 = vmatmul.msk.f32.gmra.mxu3 %vm415_vm1, %v3573_v6  ;;  %v3602_v13 = vsel %vm316_vm2, %v383_v56, %v384_v58  ;;  %v386_v56 = vrot.slane %v3599_v2, 1 }
  0xbb   : > { %v3585_v8 = vadd.f32 %v1134_v15, %v1060_v7  ;;  %2930 = vmatpush.msk.msrb.mxu1 %vm480_vm0, %v2929_v26  ;;  %v844_v7 = vrot.slane %v3573_v6, 2  ;;  %v845_v15 = vrot.slane %v224_v57, 2  ;;  %v697_v32 = vadd.f32 %v696_v12, %v516_v30  ;;  %4904 = vst [vmem:[#allocation22_spill] sm:$0xff] %v3602_v13  ;;  %v226_v12 = vld [vmem:[%s3173_s27 + $0x1b8] sm:$0x3] }
  0xbc   : > { %v387_v58 = vrot.slane %v226_v12, 1 }
  0xbd   : > { %4902 = vst [vmem:[#allocation20_spill] sm:$0xff] %v3585_v8  ;;  %2783 = vmatmul.msk.f32.gmra.mxu0 %vm415_vm1, %v3576_v31  ;;  %2850 = vmatmul.msk.f32.gmra.mxu2 %vm415_vm1, %v3581_v14  ;;  %v1137_v46 = vpop.f32.mrf.mxu3  ;;  %v3607_v14 = vsel %vm777_vm3, %v844_v7, %v845_v15  ;;  %v847_v7 = vrot.slane %v3599_v2, 2  ;;  %v848_v15 = vrot.slane %v226_v12, 2  ;;  %v232_v12 = vld [vmem:[%s3173_s27 + $0x1e8] sm:$0x3]  ;;  %v233_v31 = vld [vmem:[%s3173_s27 + $0x1f0] sm:$0xff] }
  0xbe   : > { %4905 = vst [vmem:[#allocation23_spill] sm:$0xff] %v3607_v14 }
  0xbf   : > { %v699_v1 = vpop.f32.mrf.mxu1 }
  0xc0   : > { %v975_v33 = vpop.f32.mrf.mxu2 }
  0xc1   : > { %v1061_v26 = vadd.f32 %v975_v33, %v697_v32 }
  0xc2   : > { %v519_v8 = vpop.f32.mrf.mxu0  ;;  %2817 = vmatmul.msk.f32.gmra.mxu1 %vm415_vm1, %v3573_v6  ;;  %2885 = vmatmul.msk.f32.gmra.mxu3 %vm415_vm1, %v3599_v2 }
  0xc3   : > { %v3611_v30 = vadd.f32 %v1137_v46, %v1061_v26  ;;  %v700_v32 = vadd.f32 %v699_v1, %v519_v8  ;;  %v3621_v46 = vld [vmem:[%s3173_s27 + $0x1c0] sm:$0xff] }
  0xc4   : > { %4907 = vst [vmem:[#allocation25_spill] sm:$0xff] %v3621_v46  ;;  %v231_v1 = vld [vmem:[%s3173_s27 + $0x1e0] sm:$0xff] }
  0xc5   : > { %4906 = vst [vmem:[#allocation24_spill] sm:$0xff] %v3611_v30  ;;  %2784 = vmatmul.msk.f32.gmra.mxu0 %vm415_vm1, %v3602_v13  ;;  %2851 = vmatmul.msk.f32.gmra.mxu2 %vm415_vm1, %v3607_v14  ;;  %v1140_v57 = vpop.f32.mrf.mxu3  ;;  %v3624_v13 = vsel %vm316_vm2, %v386_v56, %v387_v58  ;;  %v3629_v14 = vsel %vm777_vm3, %v847_v7, %v848_v15  ;;  %v389_v58 = vrot.slane %v231_v1, 1  ;;  %v851_v7 = vrot.slane %v232_v12, 2 }
  0xc6   : > { %4908 = vst [vmem:[#allocation26_spill] sm:$0xff] %v3624_v13 }
  0xc7   : > { %v702_v33 = vpop.f32.mrf.mxu1  ;;  %4909 = vst [vmem:[#allocation27_spill] sm:$0xff] %v3629_v14 }
  0xc8   : > { %v978_v26 = vpop.f32.mrf.mxu2 }
  0xc9   : > { %v1062_v30 = vadd.f32 %v978_v26, %v700_v32  ;;  %v390_v32 = vrot.slane %v232_v12, 1  ;;  %v850_v26 = vrot.slane %v231_v1, 2  ;;  %v393_v12 = vrot.slane %v234_v47, 1 }
  0xca   : > { %v522_v6 = vpop.f32.mrf.mxu0  ;;  %2818 = vmatmul.msk.f32.gmra.mxu1 %vm415_vm1, %v3599_v2  ;;  %2886 = vmatmul.msk.f32.gmra.mxu3 %vm415_vm1, %v3621_v46 }
  0xcb   : > { %v3633_v8 = vadd.f32 %v1140_v57, %v1062_v30  ;;  %v703_v15 = vadd.f32 %v702_v33, %v522_v6  ;;  %v392_v33 = vrot.slane %v233_v31, 1 }
  0xcd   : > { %4910 = vst [vmem:[#allocation28_spill] sm:$0xff] %v3633_v8  ;;  %2785 = vmatmul.msk.f32.gmra.mxu0 %vm415_vm1, %v3624_v13  ;;  %2852 = vmatmul.msk.f32.gmra.mxu2 %vm415_vm1, %v3629_v14  ;;  %v1143_v56 = vpop.f32.mrf.mxu3  ;;  %v391_v8 = vsel %vm316_vm2, %v389_v58, %v390_v32  ;;  %v852_v13 = vsel %vm777_vm3, %v850_v26, %v851_v7 }
  0xcf   : > { %v705_v2 = vpop.f32.mrf.mxu1 }
  0xd0   : > { %v981_v46 = vpop.f32.mrf.mxu2 }
  0xd1   : > { %v1063_v30 = vadd.f32 %v981_v46, %v703_v15  ;;  %v853_v46 = vrot.slane %v233_v31, 2  ;;  %v854_v15 = vrot.slane %v234_v47, 2 }
  0xd2   : > { %v525_v57 = vpop.f32.mrf.mxu0  ;;  %2819 = vmatmul.msk.f32.gmra.mxu1 %vm415_vm1, %v231_v1  ;;  %2887 = vmatmul.msk.f32.gmra.mxu3 %vm415_vm1, %v233_v31  ;;  %v3652_v1 = vld [vmem:[%s3173_s27 + $0x200] sm:$0xff] }
  0xd3   : > { %v3646_v14 = vadd.f32 %v1143_v56, %v1063_v30  ;;  %v706_v58 = vadd.f32 %v705_v2, %v525_v57  ;;  %4911 = vst [vmem:[#allocation29_spill] sm:$0xff] %v3652_v1  ;;  %v3655_v56 = vsel %vm316_vm2, %v392_v33, %v393_v12  ;;  %v236_v2 = vld [vmem:[%s3173_s27 + $0x208] sm:$0x3]  ;;  %v395_v30 = vrot.slane %v3652_v1, 1 }
  0xd4   : > { %4912 = vst [vmem:[#allocation30_spill] sm:$0xff] %v3655_v56  ;;  %v856_v57 = vrot.slane %v3652_v1, 2  ;;  %v857_v33 = vrot.slane %v236_v2, 2 }
  0xd5   : > { %2786 = vmatmul.msk.f32.gmra.mxu0 %vm415_vm1, %v391_v8  ;;  %2853 = vmatmul.msk.f32.gmra.mxu2 %vm415_vm1, %v852_v13  ;;  %v1146_v6 = vpop.f32.mrf.mxu3  ;;  %v3659_v13 = vsel %vm777_vm3, %v853_v46, %v854_v15  ;;  %v3673_v15 = vld [vmem:[%s3173_s27 + $0x210] sm:$0xff] }
  0xd6   : > { %4914 = vst [vmem:[#allocation32_spill] sm:$0xff] %v3673_v15 }
  0xd7   : > { %v708_v32 = vpop.f32.mrf.mxu1 }
  0xd8   : > { %v984_v26 = vpop.f32.mrf.mxu2 }
  0xd9   : > { %v1064_v7 = vadd.f32 %v984_v26, %v706_v58 }
  0xda   : > { %v528_v55 = vpop.f32.mrf.mxu0  ;;  %2820 = vmatmul.msk.f32.gmra.mxu1 %vm415_vm1, %v233_v31  ;;  %2888 = vmatmul.msk.f32.gmra.mxu3 %vm415_vm1, %v3652_v1  ;;  %v396_v31 = vrot.slane %v236_v2, 1 }
  0xdb   : > { %v3663_v47 = vadd.f32 %v1146_v6, %v1064_v7  ;;  %v709_v46 = vadd.f32 %v708_v32, %v528_v55  ;;  %v238_v32 = vld [vmem:[%s3173_s27 + $0x218] sm:$0x3] }
  0xdc   : > { %v3676_v7 = vsel %vm316_vm2, %v395_v30, %v396_v31  ;;  %v398_v30 = vrot.slane %v3673_v15, 1  ;;  %v399_v31 = vrot.slane %v238_v32, 1 }
  0xdd   : > { %4913 = vst [vmem:[#allocation31_spill] sm:$0xff] %v3663_v47  ;;  %2787 = vmatmul.msk.f32.gmra.mxu0 %vm415_vm1, %v3655_v56  ;;  %2854 = vmatmul.msk.f32.gmra.mxu2 %vm415_vm1, %v3659_v13  ;;  %v1149_v8 = vpop.f32.mrf.mxu3  ;;  %v3681_v47 = vsel %vm777_vm3, %v856_v57, %v857_v33  ;;  %v859_v57 = vrot.slane %v3673_v15, 2  ;;  %v860_v33 = vrot.slane %v238_v32, 2 }
  0xde   : > { %4915 = vst [vmem:[#allocation33_spill] sm:$0xff] %v3676_v7  ;;  %v3698_v56 = vsel %vm316_vm2, %v398_v30, %v399_v31 }
  0xdf   : > { %v711_v12 = vpop.f32.mrf.mxu1  ;;  %4916 = vst [vmem:[#allocation34_spill] sm:$0xff] %v3681_v47 }
  0xe0   : > { %v987_v6 = vpop.f32.mrf.mxu2  ;;  %4919 = vst [vmem:[#allocation37_spill] sm:$0xff] %v3698_v56 }
  0xe1   : > { %v1065_v58 = vadd.f32 %v987_v6, %v709_v46 }
  0xe2   : > { %v531_v26 = vpop.f32.mrf.mxu0  ;;  %2821 = vmatmul.msk.f32.gmra.mxu1 %vm415_vm1, %v3652_v1  ;;  %2889 = vmatmul.msk.f32.gmra.mxu3 %vm415_vm1, %v3673_v15  ;;  %v3695_v1 = vld [vmem:[%s3173_s27 + $0x220] sm:$0xff] }
  0xe3   : > { %v3685_v55 = vadd.f32 %v1149_v8, %v1065_v58  ;;  %v712_v46 = vadd.f32 %v711_v12, %v531_v26  ;;  %4918 = vst [vmem:[#allocation36_spill] sm:$0xff] %v3695_v1  ;;  %v240_v26 = vld [vmem:[%s3173_s27 + $0x228] sm:$0x3]  ;;  %v401_v30 = vrot.slane %v3695_v1, 1 }
  0xe4   : > { %v402_v31 = vrot.slane %v240_v26, 1 }
  0xe5   : > { %4917 = vst [vmem:[#allocation35_spill] sm:$0xff] %v3685_v55  ;;  %2788 = vmatmul.msk.f32.gmra.mxu0 %vm415_vm1, %v3676_v7  ;;  %2855 = vmatmul.msk.f32.gmra.mxu2 %vm415_vm1, %v3681_v47  ;;  %v1152_v2 = vpop.f32.mrf.mxu3  ;;  %v3703_v47 = vsel %vm777_vm3, %v859_v57, %v860_v33  ;;  %v862_v57 = vrot.slane %v3695_v1, 2  ;;  %v863_v33 = vrot.slane %v240_v26, 2 }
  0xe6   : > { %4920 = vst [vmem:[#allocation38_spill] sm:$0xff] %v3703_v47 }
  0xe7   : > { %v714_v6 = vpop.f32.mrf.mxu1 }
  0xe8   : > { %v990_v8 = vpop.f32.mrf.mxu2 }
  0xe9   : > { %v1066_v58 = vadd.f32 %v990_v8, %v712_v46 }
  0xea   : > { %v534_v55 = vpop.f32.mrf.mxu0  ;;  %2822 = vmatmul.msk.f32.gmra.mxu1 %vm415_vm1, %v3673_v15  ;;  %2890 = vmatmul.msk.f32.gmra.mxu3 %vm415_vm1, %v3695_v1  ;;  %v3717_v15 = vld [vmem:[%s3173_s27 + $0x230] sm:$0xff] }
  0xeb   : > { %v3707_v12 = vadd.f32 %v1152_v2, %v1066_v58  ;;  %v715_v46 = vadd.f32 %v714_v6, %v534_v55  ;;  %4922 = vst [vmem:[#allocation40_spill] sm:$0xff] %v3717_v15  ;;  %v242_v6 = vld [vmem:[%s3173_s27 + $0x238] sm:$0x3] }
  0xed   : > { %4921 = vst [vmem:[#allocation39_spill] sm:$0xff] %v3707_v12  ;;  %2789 = vmatmul.msk.f32.gmra.mxu0 %vm415_vm1, %v3698_v56  ;;  %2856 = vmatmul.msk.f32.gmra.mxu2 %vm415_vm1, %v3703_v47  ;;  %v1155_v32 = vpop.f32.mrf.mxu3  ;;  %v3720_v56 = vsel %vm316_vm2, %v401_v30, %v402_v31  ;;  %v3725_v47 = vsel %vm777_vm3, %v862_v57, %v863_v33  ;;  %v3031_v30 = vld [vmem:[%s4822_s1 + $0x20] sm:$0xf]  ;;  %v404_v31 = vrot.slane %v3717_v15, 1  ;;  %v405_v57 = vrot.slane %v242_v6, 1 }
  0xee   : > { %4923 = vst [vmem:[#allocation41_spill] sm:$0xff] %v3720_v56  ;;  %v865_v33 = vrot.slane %v3717_v15, 2  ;;  %3032 = vmatpush.msk.msra.mxu0 %vm480_vm0, %v3031_v30 }
  0xef   : > { %v717_v8 = vpop.f32.mrf.mxu1  ;;  %4924 = vst [vmem:[#allocation42_spill] sm:$0xff] %v3725_v47 }
  0xf0   : > { %v993_v2 = vpop.f32.mrf.mxu2 }
  0xf1   : > { %v1067_v58 = vadd.f32 %v993_v2, %v715_v46 }
  0xf2   : > { %v537_v12 = vpop.f32.mrf.mxu0  ;;  %2823 = vmatmul.msk.f32.gmra.mxu1 %vm415_vm1, %v3695_v1  ;;  %2891 = vmatmul.msk.f32.gmra.mxu3 %vm415_vm1, %v3717_v15 }
  0xf3   : > { %v3729_v55 = vadd.f32 %v1155_v32, %v1067_v58  ;;  %v866_v32 = vrot.slane %v242_v6, 2  ;;  %v718_v46 = vadd.f32 %v717_v8, %v537_v12  ;;  %v3743_v58 = vld [vmem:[%s3173_s27 + $0x240] sm:$0xff]  ;;  %v244_v8 = vld [vmem:[%s3173_s27 + $0x248] sm:$0x3] }
  0xf4   : > { %4926 = vst [vmem:[#allocation44_spill] sm:$0xff] %v3743_v58  ;;  %v407_v6 = vrot.slane %v3743_v58, 1  ;;  %v408_v30 = vrot.slane %v244_v8, 1 }
  0xf5   : > { %4925 = vst [vmem:[#allocation43_spill] sm:$0xff] %v3729_v55  ;;  %2790 = vmatmul.msk.f32.gmra.mxu0 %vm415_vm1, %v3720_v56  ;;  %2857 = vmatmul.msk.f32.gmra.mxu2 %vm415_vm1, %v3725_v47  ;;  %v1158_v26 = vpop.f32.mrf.mxu3  ;;  %v3746_v56 = vsel %vm316_vm2, %v404_v31, %v405_v57  ;;  %v3751_v7 = vsel %vm777_vm3, %v865_v33, %v866_v32  ;;  %v868_v31 = vrot.slane %v3743_v58, 2  ;;  %v869_v57 = vrot.slane %v244_v8, 2 }
  0xf6   : > { %4927 = vst [vmem:[#allocation45_spill] sm:$0xff] %v3746_v56 }
  0xf7   : > { %v720_v2 = vpop.f32.mrf.mxu1  ;;  %4928 = vst [vmem:[#allocation46_spill] sm:$0xff] %v3751_v7 }
  0xf8   : > { %v996_v55 = vpop.f32.mrf.mxu2 }
  0xf9   : > { %v1068_v47 = vadd.f32 %v996_v55, %v718_v46  ;;  %v3765_v46 = vld [vmem:[%s3173_s27 + $0x250] sm:$0xff] }
  0xfa   : > { %v540_v1 = vpop.f32.mrf.mxu0  ;;  %2824 = vmatmul.msk.f32.gmra.mxu1 %vm415_vm1, %v3717_v15  ;;  %2892 = vmatmul.msk.f32.gmra.mxu3 %vm415_vm1, %v3743_v58  ;;  %v3768_v15 = vsel %vm316_vm2, %v407_v6, %v408_v30  ;;  %v410_v6 = vrot.slane %v3765_v46, 1 }
  0xfb   : > { %v3755_v12 = vadd.f32 %v1158_v26, %v1068_v47  ;;  %v721_v33 = vadd.f32 %v720_v2, %v540_v1  ;;  %v246_v2 = vld [vmem:[%s3173_s27 + $0x258] sm:$0x3] }
  0xfc   : > { %v411_v30 = vrot.slane %v246_v2, 1 }
  0xfd   : > { %4929 = vst [vmem:[#allocation47_spill] sm:$0xff] %v3755_v12  ;;  %2791 = vmatmul.msk.f32.gmra.mxu0 %vm415_vm1, %v3746_v56  ;;  %2858 = vmatmul.msk.f32.gmra.mxu2 %vm415_vm1, %v3751_v7  ;;  %v1161_v55 = vpop.f32.mrf.mxu3  ;;  %v3773_v7 = vsel %vm777_vm3, %v868_v31, %v869_v57  ;;  %v872_v31 = vrot.slane %v246_v2, 2 }
  0xfe   : > { %4930 = vst [vmem:[#allocation48_spill] sm:$0xff] %v3773_v7  ;;  %v3790_v56 = vsel %vm316_vm2, %v410_v6, %v411_v30 }
  0xff   : > { %v723_v32 = vpop.f32.mrf.mxu1 }
 0x100   : > { %v999_v47 = vpop.f32.mrf.mxu2 }
 0x101   : > { %v1069_v26 = vadd.f32 %v999_v47, %v721_v33  ;;  %v871_v33 = vrot.slane %v3765_v46, 2 }
 0x102   : > { %v543_v12 = vpop.f32.mrf.mxu0  ;;  %2825 = vmatmul.msk.f32.gmra.mxu1 %vm415_vm1, %v3743_v58  ;;  %2893 = vmatmul.msk.f32.gmra.mxu3 %vm415_vm1, %v3765_v46  ;;  %v3787_v58 = vld [vmem:[%s3173_s27 + $0x260] sm:$0xff] }
 0x103   : > { %v3777_v1 = vadd.f32 %v1161_v55, %v1069_v26  ;;  %v724_v57 = vadd.f32 %v723_v32, %v543_v12 }
 0x105   : > { %4931 = vst [vmem:[#allocation49_spill] sm:$0xff] %v3777_v1  ;;  %2792 = vmatmul.msk.f32.gmra.mxu0 %vm415_vm1, %v3768_v15  ;;  %2859 = vmatmul.msk.f32.gmra.mxu2 %vm415_vm1, %v3773_v7  ;;  %v1164_v8 = vpop.f32.mrf.mxu3  ;;  %v3795_v7 = vsel %vm777_vm3, %v871_v33, %v872_v31 }
 0x107   : > { %v726_v47 = vpop.f32.mrf.mxu1 }
 0x108   : > { %v1002_v55 = vpop.f32.mrf.mxu2 }
 0x109   : > { %v1070_v26 = vadd.f32 %v1002_v55, %v724_v57 }
 0x10a   : > { %v546_v1 = vpop.f32.mrf.mxu0  ;;  %2826 = vmatmul.msk.f32.gmra.mxu1 %vm415_vm1, %v3765_v46  ;;  %2894 = vmatmul.msk.f32.gmra.mxu3 %vm415_vm1, %v3787_v58 }
 0x10b   : > { %v3799_v2 = vadd.f32 %v1164_v8, %v1070_v26  ;;  %v727_v32 = vadd.f32 %v726_v47, %v546_v1 }
 0x10d   : > { %2793 = vmatmul.msk.f32.gmra.mxu0 %vm415_vm1, %v3790_v56  ;;  %2860 = vmatmul.msk.f32.gmra.mxu2 %vm415_vm1, %v3795_v7  ;;  %v1167_v12 = vpop.f32.mrf.mxu3 }
 0x10f   : > { %v729_v6 = vpop.f32.mrf.mxu1 }
 0x110   : > { %v1005_v30 = vpop.f32.mrf.mxu2 }
 0x111   : > { %v1071_v57 = vadd.f32 %v1005_v30, %v727_v32 }
 0x112   : > { %v549_v55 = vpop.f32.mrf.mxu0  ;;  %2931 = vmatmul.msk.f32.vlgmr.msrb.gmra.mxu1 %vm415_vm1, %v3193_v21  ;;  %2999 = vmatmul.msk.f32.vlgmr.msrb.gmra.mxu3 %vm415_vm1, %v3208_v28 }
 0x113   : > { %v3809_v8 = vadd.f32 %v1167_v12, %v1071_v57  ;;  %v730_v1 = vadd.f32 %v729_v6, %v549_v55 }
 0x115   : > { %2897 = vmatmul.msk.f32.vlgmr.msrb.gmra.mxu0 %vm415_vm1, %v3189_v20  ;;  %2965 = vmatmul.msk.f32.vlgmr.msrb.gmra.mxu2 %vm415_vm1, %v3186_v19  ;;  %v1170_v33 = vpop.f32.mrf.mxu3 }
 0x117   : > { %v732_v31 = vpop.f32.mrf.mxu1 }
 0x118   : > { %v1008_v47 = vpop.f32.mrf.mxu2 }
 0x119   : > { %v1072_v26 = vadd.f32 %v1008_v47, %v730_v1 }
 0x11a   : > { %v552_v32 = vpop.f32.mrf.mxu0  ;;  %2932 = vmatmul.msk.f32.gmra.mxu1 %vm415_vm1, %v3213_v29  ;;  %3000 = vmatmul.msk.f32.gmra.mxu3 %vm415_vm1, %v3228_v36 }
 0x11b   : > { %v3819_v21 = vadd.f32 %v1170_v33, %v1072_v26  ;;  %v733_v20 = vadd.f32 %v732_v31, %v552_v32 }
 0x11d   : > { %4932 = vst [vmem:[#allocation50_spill] sm:$0xff] %v3819_v21  ;;  %2898 = vmatmul.msk.f32.gmra.mxu0 %vm415_vm1, %v3208_v28  ;;  %2966 = vmatmul.msk.f32.gmra.mxu2 %vm415_vm1, %v3205_v27  ;;  %v1173_v19 = vpop.f32.mrf.mxu3 }
 0x11f   : > { %v735_v12 = vpop.f32.mrf.mxu1 }
 0x120   : > { %v1011_v6 = vpop.f32.mrf.mxu2 }
 0x121   : > { %v1073_v30 = vadd.f32 %v1011_v6, %v733_v20 }
 0x122   : > { %v555_v57 = vpop.f32.mrf.mxu0  ;;  %2933 = vmatmul.msk.f32.gmra.mxu1 %vm415_vm1, %v3233_v37  ;;  %3001 = vmatmul.msk.f32.gmra.mxu3 %vm415_vm1, %v3248_v44 }
 0x123   : > { %v3829_v55 = vadd.f32 %v1173_v19, %v1073_v30  ;;  %v736_v28 = vadd.f32 %v735_v12, %v555_v57 }
 0x125   : > { %4933 = vst [vmem:[#allocation51_spill] sm:$0xff] %v3829_v55  ;;  %2899 = vmatmul.msk.f32.gmra.mxu0 %vm415_vm1, %v3228_v36  ;;  %2967 = vmatmul.msk.f32.gmra.mxu2 %vm415_vm1, %v3225_v35  ;;  %v1176_v27 = vpop.f32.mrf.mxu3 }
 0x127   : > { %v738_v33 = vpop.f32.mrf.mxu1 }
 0x128   : > { %v1014_v1 = vpop.f32.mrf.mxu2 }
 0x129   : > { %v1074_v31 = vadd.f32 %v1014_v1, %v736_v28 }
 0x12a   : > { %v558_v47 = vpop.f32.mrf.mxu0  ;;  %2934 = vmatmul.msk.f32.gmra.mxu1 %vm415_vm1, %v3253_v45  ;;  %3002 = vmatmul.msk.f32.gmra.mxu3 %vm415_vm1, %v3268_v52 }
 0x12b   : > { %v3839_v26 = vadd.f32 %v1176_v27, %v1074_v31  ;;  %v739_v36 = vadd.f32 %v738_v33, %v558_v47  ;;  %v188_v27 = vld [vmem:[%s3173_s27 + $0x88] sm:$0x3] }
 0x12d   : > { %4934 = vst [vmem:[#allocation52_spill] sm:$0xff] %v3839_v26  ;;  %2900 = vmatmul.msk.f32.gmra.mxu0 %vm415_vm1, %v3248_v44  ;;  %2968 = vmatmul.msk.f32.gmra.mxu2 %vm415_vm1, %v3245_v43  ;;  %v1179_v35 = vpop.f32.mrf.mxu3 }
 0x12f   : > { %v741_v32 = vpop.f32.mrf.mxu1 }
 0x130   : > { %v1017_v19 = vpop.f32.mrf.mxu2 }
 0x131   : > { %v1075_v20 = vadd.f32 %v1017_v19, %v739_v36  ;;  %v3869_v19 = vld [vmem:[%s3173_s27 + $0x90] sm:$0xff] }
 0x132   : > { %v561_v12 = vpop.f32.mrf.mxu0  ;;  %2935 = vmatmul.msk.f32.gmra.mxu1 %vm415_vm1, %v3273_v53  ;;  %3003 = vmatmul.msk.f32.gmra.mxu3 %vm415_vm1, %v3288_v60 }
 0x133   : > { %v3849_v6 = vadd.f32 %v1179_v35, %v1075_v20  ;;  %v742_v44 = vadd.f32 %v741_v32, %v561_v12  ;;  %v3872_v20 = vld [vmem:[%s3173_s27 + $0x98] sm:$0x3] }
 0x135   : > { %4935 = vst [vmem:[#allocation53_spill] sm:$0xff] %v3849_v6  ;;  %2901 = vmatmul.msk.f32.gmra.mxu0 %vm415_vm1, %v3268_v52  ;;  %2969 = vmatmul.msk.f32.gmra.mxu2 %vm415_vm1, %v3265_v51  ;;  %v1182_v43 = vpop.f32.mrf.mxu3  ;;  %v1254_v52 = vrot.slane %v3305_v3, 1  ;;  %v1255_v51 = vrot.slane %v188_v27, 1 }
 0x137   : > { %v744_v30 = vpop.f32.mrf.mxu1  ;;  %v1256_v36 = vsel %vm316_vm2, %v1254_v52, %v1255_v51 }
 0x138   : > { %v1020_v57 = vpop.f32.mrf.mxu2 }
 0x139   : > { %v1076_v28 = vadd.f32 %v1020_v57, %v742_v44  ;;  %v1761_v57 = vrot.slane %v3872_v20, 1 }
 0x13a   : > { %v564_v33 = vpop.f32.mrf.mxu0  ;;  %2936 = vmatmul.msk.f32.gmra.mxu1 %vm415_vm1, %v3293_v61  ;;  %3004 = vmatmul.msk.f32.gmra.mxu3 %vm415_vm1, %v3308_v4 }
 0x13b   : > { %v3861_v1 = vadd.f32 %v1182_v43, %v1076_v28  ;;  %v745_v47 = vadd.f32 %v744_v30, %v564_v33  ;;  %v1424_v43 = vrot.slane %v3305_v3, 2  ;;  %v1425_v30 = vrot.slane %v188_v27, 2 }
 0x13d   : > { %4936 = vst [vmem:[#allocation54_spill] sm:$0xff] %v3861_v1  ;;  %2902 = vmatmul.msk.f32.gmra.mxu0 %vm415_vm1, %v3288_v60  ;;  %2970 = vmatmul.msk.f32.gmra.mxu2 %vm415_vm1, %v3285_v59  ;;  %v1185_v31 = vpop.f32.mrf.mxu3  ;;  %v1760_v60 = vrot.slane %v3869_v19, 1  ;;  %v3887_v51 = vsel %vm777_vm3, %v1424_v43, %v1425_v30  ;;  %v4206_v1 = vld [vmem:[%s3173_s27 + $0x278] sm:$0x3] }
 0x13f   : > { %v747_v35 = vpop.f32.mrf.mxu1 }
 0x140   : > { %v1023_v32 = vpop.f32.mrf.mxu2 }
 0x141   : > { %v1077_v12 = vadd.f32 %v1023_v32, %v745_v47 }
 0x142   : > { %v567_v44 = vpop.f32.mrf.mxu0  ;;  %2937 = vmatmul.msk.f32.gmra.mxu1 %vm415_vm1, %v3313_v5  ;;  %3005 = vmatmul.msk.f32.gmra.mxu3 %vm415_vm1, %v1256_v36 }
 0x143   : > { %v3878_v59 = vadd.f32 %v1185_v31, %v1077_v12  ;;  %v748_v33 = vadd.f32 %v747_v35, %v567_v44  ;;  %v1762_v31 = vsel %vm316_vm2, %v1760_v60, %v1761_v57 }
 0x145   : > { %4937 = vst [vmem:[#allocation55_spill] sm:$0xff] %v3878_v59  ;;  %2903 = vmatmul.msk.f32.gmra.mxu0 %vm415_vm1, %v3308_v4  ;;  %2971 = vmatmul.msk.f32.gmra.mxu2 %vm415_vm1, %v3305_v3  ;;  %v1188_v28 = vpop.f32.mrf.mxu3  ;;  %v2240_v59 = vld [vmem:[%s4823_s2 + $0x58] sm:$0xff] }
 0x147   : > { %v750_v52 = vpop.f32.mrf.mxu1 }
 0x148   : > { %v1026_v47 = vpop.f32.mrf.mxu2 }
 0x149   : > { %v1078_v32 = vadd.f32 %v1026_v47, %v748_v33 }
 0x14a   : > { %v570_v12 = vpop.f32.mrf.mxu0  ;;  %2938 = vmatmul.msk.f32.gmra.mxu1 %vm415_vm1, %v3887_v51  ;;  %3006 = vmatmul.msk.f32.gmra.mxu3 %vm415_vm1, %v1762_v31 }
 0x14b   : > { %v3893_v4 = vadd.f32 %v1188_v28, %v1078_v32  ;;  %v751_v27 = vadd.f32 %v750_v52, %v570_v12 }
 0x14d   : > { %4938 = vst [vmem:[#allocation56_spill] sm:$0xff] %v3893_v4  ;;  %2904 = vmatmul.msk.f32.gmra.mxu0 %vm415_vm1, %v1256_v36  ;;  %2972 = vmatmul.msk.f32.gmra.mxu2 %vm415_vm1, %v3869_v19  ;;  %v1191_v3 = vpop.f32.mrf.mxu3 }
 0x14f   : > { %v753_v35 = vpop.f32.mrf.mxu1 }
 0x150   : > { %v1029_v43 = vpop.f32.mrf.mxu2 }
 0x151   : > { %v1079_v44 = vadd.f32 %v1029_v43, %v751_v27 }
 0x152   : > { %v573_v60 = vpop.f32.mrf.mxu0  ;;  %2939 = vmatmul.msk.f32.gmra.mxu1 %vm415_vm1, %v3339_v25  ;;  %3007 = vmatmul.msk.f32.gmra.mxu3 %vm415_vm1, %v3354_v38 }
 0x153   : > { %v3902_v30 = vadd.f32 %v1191_v3, %v1079_v44  ;;  %v754_v57 = vadd.f32 %v753_v35, %v573_v60 }
 0x155   : > { %4939 = vst [vmem:[#allocation57_spill] sm:$0xff] %v3902_v30  ;;  %2905 = vmatmul.msk.f32.gmra.mxu0 %vm415_vm1, %v3335_v24  ;;  %2973 = vmatmul.msk.f32.gmra.mxu2 %vm415_vm1, %v3332_v23  ;;  %v1194_v36 = vpop.f32.mrf.mxu3 }
 0x157   : > { %v756_v28 = vpop.f32.mrf.mxu1 }
 0x158   : > { %v1032_v33 = vpop.f32.mrf.mxu2 }
 0x159   : > { %v1080_v52 = vadd.f32 %v1032_v33, %v754_v57 }
 0x15a   : > { %v576_v31 = vpop.f32.mrf.mxu0  ;;  %2940 = vmatmul.msk.f32.gmra.mxu1 %vm415_vm1, %v3359_v39  ;;  %3008 = vmatmul.msk.f32.gmra.mxu3 %vm415_vm1, %v3374_v49 }
 0x15b   : > { %v3912_v25 = vadd.f32 %v1194_v36, %v1080_v52  ;;  %v757_v24 = vadd.f32 %v756_v28, %v576_v31 }
 0x15d   : > { %4940 = vst [vmem:[#allocation58_spill] sm:$0xff] %v3912_v25  ;;  %2906 = vmatmul.msk.f32.gmra.mxu0 %vm415_vm1, %v3354_v38  ;;  %2974 = vmatmul.msk.f32.gmra.mxu2 %vm415_vm1, %v3351_v34  ;;  %v1197_v23 = vpop.f32.mrf.mxu3 }
 0x15f   : > { %v759_v47 = vpop.f32.mrf.mxu1 }
 0x160   : > { %v1035_v32 = vpop.f32.mrf.mxu2 }
 0x161   : > { %v1081_v12 = vadd.f32 %v1035_v32, %v757_v24 }
 0x162   : > { %v579_v3 = vpop.f32.mrf.mxu0  ;;  %2941 = vmatmul.msk.f32.gmra.mxu1 %vm415_vm1, %v3379_v50  ;;  %3009 = vmatmul.msk.f32.gmra.mxu3 %vm415_vm1, %v3394_v63 }
 0x163   : > { %v3922_v27 = vadd.f32 %v1197_v23, %v1081_v12  ;;  %v760_v38 = vadd.f32 %v759_v47, %v579_v3  ;;  %v208_v47 = vld [vmem:[%s3173_s27 + $0x128] sm:$0x3] }
 0x165   : > { %4941 = vst [vmem:[#allocation59_spill] sm:$0xff] %v3922_v27  ;;  %2907 = vmatmul.msk.f32.gmra.mxu0 %vm415_vm1, %v3374_v49  ;;  %2975 = vmatmul.msk.f32.gmra.mxu2 %vm415_vm1, %v3371_v48  ;;  %v1200_v34 = vpop.f32.mrf.mxu3  ;;  %v4070_v27 = vld [vmem:[%s3173_s27 + $0x1d0] sm:$0xff] }
 0x167   : > { %v762_v35 = vpop.f32.mrf.mxu1 }
 0x168   : > { %v1038_v43 = vpop.f32.mrf.mxu2 }
 0x169   : > { %v1082_v44 = vadd.f32 %v1038_v43, %v760_v38 }
 0x16a   : > { %v582_v60 = vpop.f32.mrf.mxu0  ;;  %2942 = vmatmul.msk.f32.gmra.mxu1 %vm415_vm1, %v3399_v0  ;;  %3010 = vmatmul.msk.f32.gmra.mxu3 %vm415_vm1, %v3414_v10 }
 0x16b   : > { %v3932_v36 = vadd.f32 %v1200_v34, %v1082_v44  ;;  %v763_v49 = vadd.f32 %v762_v35, %v582_v60  ;;  %v3962_v60 = vld [vmem:[%s3173_s27 + $0x130] sm:$0xff] }
 0x16d   : > { %4942 = vst [vmem:[#allocation60_spill] sm:$0xff] %v3932_v36  ;;  %2908 = vmatmul.msk.f32.gmra.mxu0 %vm415_vm1, %v3394_v63  ;;  %2976 = vmatmul.msk.f32.gmra.mxu2 %vm415_vm1, %v3391_v62  ;;  %v1203_v48 = vpop.f32.mrf.mxu3 }
 0x16f   : > { %v765_v57 = vpop.f32.mrf.mxu1 }
 0x170   : > { %v1041_v28 = vpop.f32.mrf.mxu2 }
 0x171   : > { %v1083_v33 = vadd.f32 %v1041_v28, %v763_v49 }
 0x172   : > { %v585_v52 = vpop.f32.mrf.mxu0  ;;  %2943 = vmatmul.msk.f32.gmra.mxu1 %vm415_vm1, %v3419_v11  ;;  %3011 = vmatmul.msk.f32.gmra.mxu3 %vm415_vm1, %v3434_v18 }
 0x173   : > { %v3942_v31 = vadd.f32 %v1203_v48, %v1083_v33  ;;  %v766_v63 = vadd.f32 %v765_v57, %v585_v52  ;;  %v3965_v48 = vld [vmem:[%s3173_s27 + $0x138] sm:$0x3]  ;;  %v1427_v57 = vrot.slane %v3451_v40, 2  ;;  %v1428_v33 = vrot.slane %v208_v47, 2 }
 0x174   : > { %v1764_v52 = vrot.slane %v3965_v48, 1 }
 0x175   : > { %4943 = vst [vmem:[#allocation61_spill] sm:$0xff] %v3942_v31  ;;  %2909 = vmatmul.msk.f32.gmra.mxu0 %vm415_vm1, %v3414_v10  ;;  %2977 = vmatmul.msk.f32.gmra.mxu2 %vm415_vm1, %v3411_v9  ;;  %v1206_v62 = vpop.f32.mrf.mxu3  ;;  %v1257_v10 = vrot.slane %v3451_v40, 1  ;;  %v1258_v9 = vrot.slane %v208_v47, 1 }
 0x177   : > { %v768_v23 = vpop.f32.mrf.mxu1  ;;  %v1259_v43 = vsel %vm316_vm2, %v1257_v10, %v1258_v9 }
 0x178   : > { %v1044_v24 = vpop.f32.mrf.mxu2 }
 0x179   : > { %v1084_v32 = vadd.f32 %v1044_v24, %v766_v63  ;;  %v3980_v24 = vsel %vm777_vm3, %v1427_v57, %v1428_v33  ;;  %v4948_v57 = vld [vmem:[#allocation5_spill] sm:$0xff]  ;;  %v4950_v33 = vld [vmem:[#allocation3_spill] sm:$0xff] }
 0x17a   : > { %v588_v12 = vpop.f32.mrf.mxu0  ;;  %2944 = vmatmul.msk.f32.gmra.mxu1 %vm415_vm1, %v3439_v22  ;;  %3012 = vmatmul.msk.f32.gmra.mxu3 %vm415_vm1, %v3454_v41 }
 0x17b   : > { %v3954_v3 = vadd.f32 %v1206_v62, %v1084_v32  ;;  %v769_v38 = vadd.f32 %v768_v23, %v588_v12 }
 0x17d   : > { %4944 = vst [vmem:[#allocation62_spill] sm:$0xff] %v3954_v3  ;;  %2910 = vmatmul.msk.f32.gmra.mxu0 %vm415_vm1, %v3434_v18  ;;  %2978 = vmatmul.msk.f32.gmra.mxu2 %vm415_vm1, %v3431_v17  ;;  %v1209_v34 = vpop.f32.mrf.mxu3  ;;  %v1763_v18 = vrot.slane %v3962_v60, 1 }
 0x17f   : > { %v771_v35 = vpop.f32.mrf.mxu1  ;;  %v1765_v32 = vsel %vm316_vm2, %v1763_v18, %v1764_v52  ;;  %v4949_v18 = vld [vmem:[#allocation4_spill] sm:$0xff] }
 0x180   : > { %v1047_v44 = vpop.f32.mrf.mxu2  ;;  %4990 = vst [vmem:[#allocation4_spill] sm:$0xff] %v4206_v1 }
 0x181   : > { %v1085_v49 = vadd.f32 %v1047_v44, %v769_v38 }
 0x182   : > { %v591_v28 = vpop.f32.mrf.mxu0  ;;  %2945 = vmatmul.msk.f32.gmra.mxu1 %vm415_vm1, %v3459_v42  ;;  %3013 = vmatmul.msk.f32.gmra.mxu3 %vm415_vm1, %v1259_v43 }
 0x183   : > { %v3971_v17 = vadd.f32 %v1209_v34, %v1085_v49  ;;  %v772_v63 = vadd.f32 %v771_v35, %v591_v28 }
 0x185   : > { %4945 = vst [vmem:[#allocation63_spill] sm:$0xff] %v3971_v17  ;;  %2911 = vmatmul.msk.f32.gmra.mxu0 %vm415_vm1, %v3454_v41  ;;  %2979 = vmatmul.msk.f32.gmra.mxu2 %vm415_vm1, %v3451_v40  ;;  %v1212_v62 = vpop.f32.mrf.mxu3 }
 0x187   : > { %v774_v23 = vpop.f32.mrf.mxu1 }
 0x188   : > { %v1050_v12 = vpop.f32.mrf.mxu2 }
 0x189   : > { %v1086_v10 = vadd.f32 %v1050_v12, %v772_v63  ;;  %v4952_v12 = vld [vmem:[#allocation10_spill] sm:$0xff] }
 0x18a   : > { %v594_v9 = vpop.f32.mrf.mxu0  ;;  %2946 = vmatmul.msk.f32.gmra.mxu1 %vm415_vm1, %v3980_v24  ;;  %3014 = vmatmul.msk.f32.gmra.mxu3 %vm415_vm1, %v1765_v32 }
 0x18b   : > { %v3986_v41 = vadd.f32 %v1212_v62, %v1086_v10  ;;  %v775_v47 = vadd.f32 %v774_v23, %v594_v9  ;;  %v4953_v10 = vld [vmem:[#allocation8_spill] sm:$0xff] }
 0x18d   : > { %4946 = vst [vmem:[#allocation64_spill] sm:$0xff] %v3986_v41  ;;  %2912 = vmatmul.msk.f32.gmra.mxu0 %vm415_vm1, %v1259_v43  ;;  %2980 = vmatmul.msk.f32.gmra.mxu2 %vm415_vm1, %v3962_v60  ;;  %v1215_v40 = vpop.f32.mrf.mxu3  ;;  %v4964_v41 = vld [vmem:[#allocation22_spill] sm:$0xff] }
 0x18f   : > { %v1466_v34 = vpop.f32.mrf.mxu1 }
 0x190   : > { %v1053_v38 = vpop.f32.mrf.mxu2 }
 0x191   : > { %v1087_v35 = vadd.f32 %v1053_v38, %v775_v47 }
 0x192   : > { %v1296_v44 = vpop.f32.mrf.mxu0  ;;  %2947 = vmatmul.msk.f32.gmra.mxu1 %vm415_vm1, %v3485_v54  ;;  %3015 = vmatmul.msk.f32.gmra.mxu3 %vm415_vm1, %v3502_v16  ;;  %v4951_v54 = vld [vmem:[#allocation7_spill] sm:$0xff] }
 0x193   : > { %v3995_v49 = vadd.f32 %v1215_v40, %v1087_v35  ;;  %v1392_v28 = vadd.f32 %v1296_v44, %v4948_v57 }
 0x195   : > { %4947 = vst [vmem:[#allocation65_spill] sm:$0xff] %v3995_v49  ;;  %v1562_v43 = vadd.f32 %v1466_v34, %v1392_v28  ;;  %2913 = vmatmul.msk.f32.gmra.mxu0 %vm415_vm1, %v4949_v18  ;;  %2981 = vmatmul.msk.f32.gmra.mxu2 %vm415_vm1, %v4950_v33  ;;  %v1802_v52 = vpop.f32.mrf.mxu3  ;;  %v4954_v34 = vld [vmem:[#allocation6_spill] sm:$0xff]  ;;  %v4957_v33 = vld [vmem:[#allocation12_spill] sm:$0xff]  ;;  %v4963_v49 = vld [vmem:[#allocation19_spill] sm:$0xff] }
 0x196   : > { %v4956_v18 = vld [vmem:[#allocation14_spill] sm:$0xff] }
 0x197   : > { %v1469_v62 = vpop.f32.mrf.mxu1 }
 0x198   : > { %v1628_v63 = vpop.f32.mrf.mxu2 }
 0x199   : > { %v1724_v23 = vadd.f32 %v1628_v63, %v1562_v43  ;;  %v4955_v43 = vld [vmem:[#allocation11_spill] sm:$0xff] }
 0x19a   : > { %v1299_v32 = vpop.f32.mrf.mxu0  ;;  %2948 = vmatmul.msk.f32.gmra.mxu1 %vm415_vm1, %v4951_v54  ;;  %3016 = vmatmul.msk.f32.gmra.mxu3 %vm415_vm1, %v4952_v12 }
 0x19b   : > { %v1393_v9 = vadd.f32 %v1299_v32, %v4953_v10  ;;  %v4007_v40 = vadd.f32 %v1802_v52, %v1724_v23 }
 0x19d   : > { %v1563_v47 = vadd.f32 %v1469_v62, %v1393_v9  ;;  %2914 = vmatmul.msk.f32.gmra.mxu0 %vm415_vm1, %v3502_v16  ;;  %2982 = vmatmul.msk.f32.gmra.mxu2 %vm415_vm1, %v4954_v34  ;;  %v1805_v38 = vpop.f32.mrf.mxu3  ;;  %v4958_v16 = vld [vmem:[#allocation9_spill] sm:$0xff]  ;;  %v4959_v34 = vld [vmem:[#allocation15_spill] sm:$0xff] }
 0x19f   : > { %v1472_v35 = vpop.f32.mrf.mxu1 }
 0x1a0   : > { %v1631_v44 = vpop.f32.mrf.mxu2 }
 0x1a1   : > { %v1725_v57 = vadd.f32 %v1631_v44, %v1563_v47  ;;  %v4960_v44 = vld [vmem:[#allocation18_spill] sm:$0xff] }
 0x1a2   : > { %v1302_v28 = vpop.f32.mrf.mxu0  ;;  %2949 = vmatmul.msk.f32.gmra.mxu1 %vm415_vm1, %v4955_v43  ;;  %3017 = vmatmul.msk.f32.gmra.mxu3 %vm415_vm1, %v4956_v18 }
 0x1a3   : > { %v1394_v52 = vadd.f32 %v1302_v28, %v4957_v33  ;;  %v4018_v62 = vadd.f32 %v1805_v38, %v1725_v57  ;;  %v4961_v38 = vld [vmem:[#allocation16_spill] sm:$0xff] }
 0x1a5   : > { %v1564_v63 = vadd.f32 %v1472_v35, %v1394_v52  ;;  %2915 = vmatmul.msk.f32.gmra.mxu0 %vm415_vm1, %v4952_v12  ;;  %2983 = vmatmul.msk.f32.gmra.mxu2 %vm415_vm1, %v4958_v16  ;;  %v1808_v23 = vpop.f32.mrf.mxu3  ;;  %v4962_v12 = vld [vmem:[#allocation13_spill] sm:$0xff] }
 0x1a7   : > { %v1475_v32 = vpop.f32.mrf.mxu1 }
 0x1a8   : > { %v1634_v10 = vpop.f32.mrf.mxu2 }
 0x1a9   : > { %v1726_v9 = vadd.f32 %v1634_v10, %v1564_v63 }
 0x1aa   : > { %v1305_v47 = vpop.f32.mrf.mxu0  ;;  %2950 = vmatmul.msk.f32.gmra.mxu1 %vm415_vm1, %v4959_v34  ;;  %3018 = vmatmul.msk.f32.gmra.mxu3 %vm415_vm1, %v4960_v44 }
 0x1ab   : > { %v1395_v57 = vadd.f32 %v1305_v47, %v4961_v38  ;;  %v4029_v35 = vadd.f32 %v1808_v23, %v1726_v9  ;;  %v4965_v23 = vld [vmem:[#allocation20_spill] sm:$0xff]  ;;  %v4966_v47 = vld [vmem:[#allocation17_spill] sm:$0xff] }
 0x1ad   : > { %v1565_v28 = vadd.f32 %v1475_v32, %v1395_v57  ;;  %2916 = vmatmul.msk.f32.gmra.mxu0 %vm415_vm1, %v4956_v18  ;;  %2984 = vmatmul.msk.f32.gmra.mxu2 %vm415_vm1, %v4962_v12  ;;  %v1811_v33 = vpop.f32.mrf.mxu3  ;;  %v3080_v57 = vld [vmem:[%s4823_s2 + $0xf8] sm:$0xff] }
 0x1ae   : > { %2358 = vmatpush.msra.mxu2 %v3080_v57 }
 0x1af   : > { %v1478_v52 = vpop.f32.mrf.mxu1 }
 0x1b0   : > { %v1637_v63 = vpop.f32.mrf.mxu2 }
 0x1b1   : > { %v1727_v16 = vadd.f32 %v1637_v63, %v1565_v28  ;;  %v3096_v28 = vld [vmem:[%s4823_s2 + $0x178] sm:$0xff] }
 0x1b2   : > { %v1308_v10 = vpop.f32.mrf.mxu0  ;;  %2951 = vmatmul.msk.f32.gmra.mxu1 %vm415_vm1, %v4963_v49  ;;  %3019 = vmatmul.msk.f32.gmra.mxu3 %vm415_vm1, %v4964_v41 }
 0x1b3   : > { %v1396_v32 = vadd.f32 %v1308_v10, %v4965_v23  ;;  %v4040_v9 = vadd.f32 %v1811_v33, %v1727_v16  ;;  %2520 = vmatpush.msra.mxu3 %v3096_v28  ;;  %v4967_v16 = vld [vmem:[#allocation23_spill] sm:$0xff]  ;;  %v4968_v10 = vld [vmem:[#allocation26_spill] sm:$0xff]  ;;  %v4969_v23 = vld [vmem:[#allocation25_spill] sm:$0xff] }
 0x1b4   : > { %v2244_v28 = vld [vmem:[%s4823_s2 + $0x78] sm:$0xff]  ;;  %v1430_v25 = vrot.slane %v4969_v23, 2 }
 0x1b5   : > { %v1566_v18 = vadd.f32 %v1478_v52, %v1396_v32  ;;  %2917 = vmatmul.msk.f32.gmra.mxu0 %vm415_vm1, %v4960_v44  ;;  %2985 = vmatmul.msk.f32.gmra.mxu2 %vm415_vm1, %v4966_v47  ;;  %v1814_v38 = vpop.f32.mrf.mxu3  ;;  %v228_v52 = vld [vmem:[%s3173_s27 + $0x1c8] sm:$0x3]  ;;  %v1260_v32 = vrot.slane %v4969_v23, 1 }
 0x1b6   : > { %v4970_v47 = vld [vmem:[#allocation24_spill] sm:$0xff]  ;;  %v1261_v57 = vrot.slane %v228_v52, 1  ;;  %2245 = vmatpush.msra.mxu1 %v2244_v28 }
 0x1b7   : > { %v1481_v12 = vpop.f32.mrf.mxu1 }
 0x1b8   : > { %v1640_v33 = vpop.f32.mrf.mxu2  ;;  %v1262_v36 = vsel %vm316_vm2, %v1260_v32, %v1261_v57  ;;  %v1431_v57 = vrot.slane %v228_v52, 2 }
 0x1b9   : > { %v1728_v63 = vadd.f32 %v1640_v33, %v1566_v18  ;;  %v4971_v33 = vld [vmem:[#allocation21_spill] sm:$0xff] }
 0x1ba   : > { %v1311_v44 = vpop.f32.mrf.mxu0  ;;  %2952 = vmatmul.msk.f32.gmra.mxu1 %vm415_vm1, %v4967_v16  ;;  %3020 = vmatmul.msk.f32.gmra.mxu3 %vm415_vm1, %v4968_v10  ;;  %v4095_v52 = vsel %vm777_vm3, %v1430_v25, %v1431_v57  ;;  %v2243_v25 = vld [vmem:[%s4823_s2 + $0x70] sm:$0xff] }
 0x1bb   : > { %v1397_v17 = vadd.f32 %v1311_v44, %v4970_v47  ;;  %v4059_v3 = vadd.f32 %v1814_v38, %v1728_v63  ;;  %v4073_v44 = vld [vmem:[%s3173_s27 + $0x1d8] sm:$0x3]  ;;  %2246 = vmatpush.msra.mxu1 %v2243_v25 }
 0x1bc   : > { %v1767_v30 = vrot.slane %v4073_v44, 1 }
 0x1bd   : > { %v1567_v18 = vadd.f32 %v1481_v12, %v1397_v17  ;;  %2918 = vmatmul.msk.f32.gmra.mxu0 %vm415_vm1, %v4964_v41  ;;  %2986 = vmatmul.msk.f32.gmra.mxu2 %vm415_vm1, %v4971_v33  ;;  %v1817_v31 = vpop.f32.mrf.mxu3  ;;  %v4972_v17 = vld [vmem:[#allocation27_spill] sm:$0xff]  ;;  %v1766_v41 = vrot.slane %v4070_v27, 1  ;;  %v4973_v12 = vld [vmem:[#allocation28_spill] sm:$0xff] }
 0x1bf   : > { %v1484_v63 = vpop.f32.mrf.mxu1 }
 0x1c0   : > { %v1643_v38 = vpop.f32.mrf.mxu2 }
 0x1c1   : > { %v1729_v47 = vadd.f32 %v1643_v38, %v1567_v18  ;;  %v3079_v18 = vld [vmem:[%s4823_s2 + $0xf0] sm:$0xff] }
 0x1c2   : > { %v1314_v28 = vpop.f32.mrf.mxu0  ;;  %2953 = vmatmul.msk.f32.gmra.mxu1 %vm415_vm1, %v4972_v17  ;;  %3021 = vmatmul.msk.f32.gmra.mxu3 %vm415_vm1, %v1262_v36  ;;  %v3095_v38 = vld [vmem:[%s4823_s2 + $0x170] sm:$0xff] }
 0x1c3   : > { %v1398_v33 = vadd.f32 %v1314_v28, %v4973_v12  ;;  %v4081_v32 = vadd.f32 %v1817_v31, %v1729_v47  ;;  %2359 = vmatpush.msra.mxu2 %v3079_v18  ;;  %2521 = vmatpush.msra.mxu3 %v3095_v38 }
 0x1c5   : > { %v1568_v4 = vadd.f32 %v1484_v63, %v1398_v33  ;;  %2919 = vmatmul.msk.f32.gmra.mxu0 %vm415_vm1, %v4968_v10  ;;  %2987 = vmatmul.msk.f32.gmra.mxu2 %vm415_vm1, %v4969_v23  ;;  %v1820_v31 = vpop.f32.mrf.mxu3  ;;  %v1768_v63 = vsel %vm316_vm2, %v1766_v41, %v1767_v30 }
 0x1c7   : > { %v1487_v23 = vpop.f32.mrf.mxu1 }
 0x1c8   : > { %v1646_v10 = vpop.f32.mrf.mxu2 }
 0x1c9   : > { %v1730_v47 = vadd.f32 %v1646_v10, %v1568_v4  ;;  %v3094_v10 = vld [vmem:[%s4823_s2 + $0x168] sm:$0xff] }
 0x1ca   : > { %v1317_v28 = vpop.f32.mrf.mxu0  ;;  %2954 = vmatmul.msk.f32.gmra.mxu1 %vm415_vm1, %v4095_v52  ;;  %3022 = vmatmul.msk.f32.gmra.mxu3 %vm415_vm1, %v1768_v63  ;;  %v3078_v63 = vld [vmem:[%s4823_s2 + $0xe8] sm:$0xff] }
 0x1cb   : > { %v1399_v12 = vadd.f32 %v1317_v28, %v3646_v14  ;;  %v4102_v33 = vadd.f32 %v1820_v31, %v1730_v47  ;;  %v4974_v14 = vld [vmem:[#allocation33_spill] sm:$0xff]  ;;  %v4975_v31 = vld [vmem:[#allocation30_spill] sm:$0xff]  ;;  %2360 = vmatpush.msra.mxu2 %v3078_v63  ;;  %2522 = vmatpush.msra.mxu3 %v3094_v10  ;;  %v2241_v10 = vld [vmem:[%s4823_s2 + $0x60] sm:$0xff] }
 0x1cc   : > { %v4977_v47 = vld [vmem:[#allocation34_spill] sm:$0xff]  ;;  %v4978_v28 = vld [vmem:[#allocation37_spill] sm:$0xff] }
 0x1cd   : > { %v1569_v57 = vadd.f32 %v1487_v23, %v1399_v12  ;;  %2920 = vmatmul.msk.f32.gmra.mxu0 %vm415_vm1, %v1262_v36  ;;  %2988 = vmatmul.msk.f32.gmra.mxu2 %vm415_vm1, %v4070_v27  ;;  %v1823_v30 = vpop.f32.mrf.mxu3  ;;  %v4976_v36 = vld [vmem:[#allocation29_spill] sm:$0xff]  ;;  %v2242_v23 = vld [vmem:[%s4823_s2 + $0x68] sm:$0xff] }
 0x1ce   : > { %2247 = vmatpush.msra.mxu1 %v2242_v23  ;;  %v4979_v12 = vld [vmem:[#allocation32_spill] sm:$0xff]  ;;  %v4984_v63 = vld [vmem:[#allocation45_spill] sm:$0xff] }
 0x1d0   : > { %v1649_v4 = vpop.f32.mrf.mxu2  ;;  %2248 = vmatpush.msra.mxu1 %v2241_v10 }
 0x1d1   : > { %v1731_v41 = vadd.f32 %v1649_v4, %v1569_v57  ;;  %v4980_v57 = vld [vmem:[#allocation38_spill] sm:$0xff]  ;;  %v4981_v4 = vld [vmem:[#allocation41_spill] sm:$0xff] }
 0x1d2   : > { %v4110_v18 = vpop.f32.mrf.mxu0  ;;  %2955 = vmatmul.msk.f32.gmra.mxu1 %vm415_vm1, %v3659_v13  ;;  %3023 = vmatmul.msk.f32.gmra.mxu3 %vm415_vm1, %v4974_v14 }
 0x1d3   : > { %v4116_v38 = vadd.f32 %v1823_v30, %v1731_v41  ;;  %v4982_v30 = vld [vmem:[#allocation36_spill] sm:$0xff]  ;;  %v3077_v41 = vld [vmem:[%s4823_s2 + $0xe0] sm:$0xff]  ;;  %2249 = vmatpush.msra.mxu1 %v2240_v59  ;;  %v1433_v59 = vrot.slane %v3787_v58, 2 }
 0x1d4   : > { %2361 = vmatpush.msra.mxu2 %v3077_v41  ;;  %v3092_v41 = vld [vmem:[%s4823_s2 + $0x158] sm:$0xff] }
 0x1d5   : > { %2921 = vmatmul.msk.f32.gmra.mxu0 %vm415_vm1, %v4975_v31  ;;  %2989 = vmatmul.msk.f32.gmra.mxu2 %vm415_vm1, %v4976_v36  ;;  %v4983_v36 = vld [vmem:[#allocation42_spill] sm:$0xff] }
 0x1da   : > { %v4128_v13 = vpop.f32.mrf.mxu0  ;;  %2956 = vmatmul.msk.f32.gmra.mxu1 %vm415_vm1, %v4977_v47  ;;  %3024 = vmatmul.msk.f32.gmra.mxu3 %vm415_vm1, %v4978_v28 }
 0x1dd   : > { %2922 = vmatmul.msk.f32.gmra.mxu0 %vm415_vm1, %v4974_v14  ;;  %2990 = vmatmul.msk.f32.gmra.mxu2 %vm415_vm1, %v4979_v12  ;;  %v3093_v14 = vld [vmem:[%s4823_s2 + $0x160] sm:$0xff]  ;;  %v4986_v12 = vld [vmem:[#allocation46_spill] sm:$0xff] }
 0x1de   : > { %2523 = vmatpush.msra.mxu3 %v3093_v14  ;;  %v248_v14 = vld [vmem:[%s3173_s27 + $0x268] sm:$0x3] }
 0x1df   : > { %v1434_v26 = vrot.slane %v248_v14, 2 }
 0x1e0   : > { %2524 = vmatpush.msra.mxu3 %v3092_v41  ;;  %v4203_v41 = vld [vmem:[%s3173_s27 + $0x270] sm:$0xff] }
 0x1e1   : > { %4989 = vst [vmem:[#allocation5_spill] sm:$0xff] %v4203_v41 }
 0x1e2   : > { %v4141_v25 = vpop.f32.mrf.mxu0  ;;  %2957 = vmatmul.msk.f32.gmra.mxu1 %vm415_vm1, %v4980_v57  ;;  %3025 = vmatmul.msk.f32.gmra.mxu3 %vm415_vm1, %v4981_v4 }
 0x1e5   : > { %2923 = vmatmul.msk.f32.gmra.mxu0 %vm415_vm1, %v4978_v28  ;;  %2991 = vmatmul.msk.f32.gmra.mxu2 %vm415_vm1, %v4982_v30  ;;  %v4985_v28 = vld [vmem:[#allocation40_spill] sm:$0xff] }
 0x1e6   : > { %v4987_v30 = vld [vmem:[#allocation44_spill] sm:$0xff] }
 0x1ea   : > { %v4157_v31 = vpop.f32.mrf.mxu0  ;;  %2958 = vmatmul.msk.f32.gmra.mxu1 %vm415_vm1, %v4983_v36  ;;  %3026 = vmatmul.msk.f32.gmra.mxu3 %vm415_vm1, %v4984_v63 }
 0x1ed   : > { %2924 = vmatmul.msk.f32.gmra.mxu0 %vm415_vm1, %v4981_v4  ;;  %2992 = vmatmul.msk.f32.gmra.mxu2 %vm415_vm1, %v4985_v28  ;;  %v3076_v4 = vld [vmem:[%s4823_s2 + $0xd8] sm:$0xff]  ;;  %v4988_v28 = vld [vmem:[#allocation48_spill] sm:$0xff] }
 0x1ee   : > { %2362 = vmatpush.msra.mxu2 %v3076_v4 }
 0x1f2   : > { %v4170_v23 = vpop.f32.mrf.mxu0  ;;  %2959 = vmatmul.msk.f32.gmra.mxu1 %vm415_vm1, %v4986_v12  ;;  %3027 = vmatmul.msk.f32.gmra.mxu3 %vm415_vm1, %v3768_v15 }
 0x1f5   : > { %2925 = vmatmul.msk.f32.gmra.mxu0 %vm415_vm1, %v4984_v63  ;;  %2993 = vmatmul.msk.f32.gmra.mxu2 %vm415_vm1, %v4987_v30  ;;  %v1263_v63 = vrot.slane %v3787_v58, 1  ;;  %v1264_v30 = vrot.slane %v248_v14, 1  ;;  %v4227_v14 = vsel %vm777_vm3, %v1433_v59, %v1434_v26  ;;  %v3074_v26 = vld [vmem:[%s4823_s2 + $0xc8] sm:$0xff] }
 0x1f6   : > { %4991 = vst [vmem:[#allocation3_spill] sm:$0xff] %v4227_v14 }
 0x1f7   : > { %v1265_v4 = vsel %vm316_vm2, %v1263_v63, %v1264_v30  ;;  %v3075_v63 = vld [vmem:[%s4823_s2 + $0xd0] sm:$0xff] }
 0x1f8   : > { %v3091_v30 = vld [vmem:[%s4823_s2 + $0x150] sm:$0xff]  ;;  %2363 = vmatpush.msra.mxu2 %v3075_v63  ;;  %v3073_v63 = vld [vmem:[%s4823_s2 + $0xc0] sm:$0xff] }
 0x1f9   : > { %2525 = vmatpush.msra.mxu3 %v3091_v30  ;;  %v2237_v30 = vld [vmem:[%s4823_s2 + $0x40] sm:$0xff] }
 0x1fa   : > { %v4187_v10 = vpop.f32.mrf.mxu0  ;;  %2960 = vmatmul.msk.f32.gmra.mxu1 %vm415_vm1, %v4988_v28  ;;  %3028 = vmatmul.msk.f32.gmra.mxu3 %vm415_vm1, %v3790_v56 }
 0x1fb   : > { %2364 = vmatpush.msra.mxu2 %v3074_v26 }
 0x1fd   : > { %2926 = vmatmul.msk.f32.gmra.mxu0 %vm415_vm1, %v3768_v15  ;;  %2994 = vmatmul.msk.f32.gmra.mxu2 %vm415_vm1, %v3765_v46  ;;  %v1769_v15 = vrot.slane %v4203_v41, 1  ;;  %v1770_v46 = vrot.slane %v4206_v1, 1 }
 0x1fe   : > { %2365 = vmatpush.msra.mxu2 %v3073_v63  ;;  %v2233_v63 = vld [vmem:[%s4823_s2 + $0x20] sm:$0xff] }
 0x1ff   : > { %v1771_v55 = vsel %vm316_vm2, %v1769_v15, %v1770_v46  ;;  %v2238_v15 = vld [vmem:[%s4823_s2 + $0x48] sm:$0xff] }
 0x202   : > { %v4208_v6 = vpop.f32.mrf.mxu0  ;;  %2961 = vmatmul.msk.f32.gmra.mxu1 %vm415_vm1, %v3795_v7  ;;  %3029 = vmatmul.msk.f32.gmra.mxu3 %vm415_vm1, %v1265_v4 }
 0x205   : > { %2927 = vmatmul.msk.f32.gmra.mxu0 %vm415_vm1, %v3790_v56  ;;  %2995 = vmatmul.msk.f32.gmra.mxu2 %vm415_vm1, %v3787_v58  ;;  %v2239_v56 = vld [vmem:[%s4823_s2 + $0x50] sm:$0xff] }
 0x206   : > { %2250 = vmatpush.msra.mxu1 %v2239_v56  ;;  %v3089_v56 = vld [vmem:[%s4823_s2 + $0x140] sm:$0xff] }
 0x208   : > { %2251 = vmatpush.msra.mxu1 %v2238_v15  ;;  %v4286_v15 = vpop.f32.mrf.mxu2 }
 0x20a   : > { %v4230_v21 = vpop.f32.mrf.mxu0  ;;  %2962 = vmatmul.msk.f32.gmra.mxu1 %vm415_vm1, %v4227_v14  ;;  %3030 = vmatmul.msk.f32.gmra.mxu3 %vm415_vm1, %v1771_v55  ;;  %v3090_v55 = vld [vmem:[%s4823_s2 + $0x148] sm:$0xff] }
 0x20b   : > { %2526 = vmatpush.msra.mxu3 %v3090_v55  ;;  %2252 = vmatpush.msra.mxu1 %v2237_v30  ;;  %v2234_v55 = vld [vmem:[%s4823_s2 + $0x28] sm:$0xff] }
 0x20d   : > { %2928 = vmatmul.msk.f32.gmra.mxu0 %vm415_vm1, %v1265_v4  ;;  %2996 = vmatmul.msk.f32.gmra.mxu2 %vm415_vm1, %v4203_v41  ;;  %v4253_v4 = vpop.f32.mrf.mxu1 }
 0x20e   : > { %2527 = vmatpush.msra.mxu3 %v3089_v56  ;;  %v2232_v56 = vld [vmem:[%s4823_s2 + $0x18] sm:$0xff] }
 0x212   : > { %v4241_v58 = vpop.f32.mrf.mxu0 }
 0x213   : > { %4992 = vst [vmem:[#allocation7_spill] sm:$0xff] %v4241_v58 }
 0x215   : > { %3033 = vmatmul.msk.f32.vlgmr.msra.gmra.mxu0 %vm415_vm1, %v3213_v29  ;;  %v4262_v46 = vpop.f32.mrf.mxu1 }
 0x21a   : > { %v4251_v59 = vpop.f32.mrf.mxu0 }
 0x21b   : > { %4993 = vst [vmem:[#allocation10_spill] sm:$0xff] %v4251_v59 }
 0x21d   : > { %3034 = vmatmul.msk.f32.gmra.mxu0 %vm415_vm1, %v3233_v37  ;;  %v2236_v37 = vld [vmem:[%s4823_s2 + $0x38] sm:$0xff]  ;;  %v4293_v30 = vpop.f32.mrf.mxu1 }
 0x21e   : > { %2253 = vmatpush.msra.mxu1 %v2236_v37  ;;  %v2231_v37 = vld [vmem:[%s4823_s2 + $0x10] sm:$0xff] }
 0x222   : > { %v4260_v29 = vpop.f32.mrf.mxu0 }
 0x223   : > { %4994 = vst [vmem:[#allocation8_spill] sm:$0xff] %v4260_v29 }
 0x225   : > { %3035 = vmatmul.msk.f32.gmra.mxu0 %vm415_vm1, %v3253_v45  ;;  %v2235_v45 = vld [vmem:[%s4823_s2 + $0x30] sm:$0xff] }
 0x226   : > { %2254 = vmatpush.msra.mxu1 %v2235_v45 }
 0x228   : > { %2255 = vmatpush.msra.mxu1 %v2234_v55  ;;  %v3072_v55 = vld [vmem:[%s4823_s2 + $0xb8] sm:$0xff] }
 0x229   : > { %2366 = vmatpush.msra.mxu2 %v3072_v55  ;;  %v3071_v55 = vld [vmem:[%s4823_s2 + $0xb0] sm:$0xff] }
 0x22a   : > { %v4281_v26 = vpop.f32.mrf.mxu0  ;;  %2256 = vmatpush.msra.mxu1 %v2233_v63  ;;  %v2229_v63 = vld [vmem:[%s4823_s2] sm:$0xff] }
 0x22b   : > { %4995 = vst [vmem:[#allocation6_spill] sm:$0xff] %v4281_v26  ;;  %2367 = vmatpush.msra.mxu2 %v3071_v55  ;;  %v3086_v55 = vld [vmem:[%s4823_s2 + $0x128] sm:$0xff] }
 0x22c   : > { %2257 = vmatpush.msra.mxu1 %v2232_v56  ;;  %v3088_v56 = vld [vmem:[%s4823_s2 + $0x138] sm:$0xff] }
 0x22d   : > { %3036 = vmatmul.msk.f32.gmra.mxu0 %vm415_vm1, %v3273_v53  ;;  %v2230_v53 = vld [vmem:[%s4823_s2 + $0x8] sm:$0xff]  ;;  %2528 = vmatpush.msra.mxu3 %v3088_v56  ;;  %v1931_v56 = vrot.slane %v3872_v20, 2 }
 0x22e   : > { %2258 = vmatpush.msra.mxu1 %v2231_v37  ;;  %v4317_v37 = vpop.f32.mrf.mxu2  ;;  %v3070_v20 = vld [vmem:[%s4823_s2 + $0xa8] sm:$0xff] }
 0x22f   : > { %2368 = vmatpush.msra.mxu2 %v3070_v20  ;;  %v3069_v20 = vld [vmem:[%s4823_s2 + $0xa0] sm:$0xff] }
 0x230   : > { %2259 = vmatpush.msra.mxu1 %v2230_v53  ;;  %v4881_v53 = vmov 0.0  }
 0x231   : > { %2369 = vmatpush.msra.mxu2 %v3069_v20  ;;  %v3067_v20 = vld [vmem:[%s4823_s2 + $0x90] sm:$0xff] }
 0x232   : > { %v4301_v45 = vpop.f32.mrf.mxu0  ;;  %2260 = vmatpush.msra.mxu1 %v2229_v63  ;;  %v3087_v63 = vld [vmem:[%s4823_s2 + $0x130] sm:$0xff] }
 0x233   : > { %4996 = vst [vmem:[#allocation11_spill] sm:$0xff] %v4301_v45  ;;  %2261 = vmatmul.f32.vlgmr.msra.gmra.mxu1 %v4881_v53  ;;  %2529 = vmatpush.msra.mxu3 %v3087_v63 }
 0x235   : > { %3037 = vmatmul.msk.f32.gmra.mxu0 %vm415_vm1, %v3293_v61  ;;  %v4320_v61 = vpop.f32.mrf.mxu1  ;;  %2530 = vmatpush.msra.mxu3 %v3086_v55  ;;  %v3085_v55 = vld [vmem:[%s4823_s2 + $0x120] sm:$0xff] }
 0x236   : > { %v4327_v26 = vpop.f32.mrf.mxu2 }
 0x237   : > { %2531 = vmatpush.msra.mxu3 %v3085_v55 }
 0x23a   : > { %v4322_v45 = vpop.f32.mrf.mxu0 }
 0x23b   : > { %4997 = vst [vmem:[#allocation14_spill] sm:$0xff] %v4322_v45  ;;  %2264 = vmatmul.f32.gmra.mxu1 %v4881_v53 }
 0x23d   : > { %3038 = vmatmul.msk.f32.gmra.mxu0 %vm415_vm1, %v3313_v5  ;;  %v4331_v59 = vpop.f32.mrf.mxu1  ;;  %v1930_v5 = vrot.slane %v3869_v19, 2 }
 0x242   : > { %v4329_v29 = vpop.f32.mrf.mxu0 }
 0x243   : > { %4998 = vst [vmem:[#allocation12_spill] sm:$0xff] %v4329_v29  ;;  %2267 = vmatmul.f32.gmra.mxu1 %v4881_v53  ;;  %v4344_v29 = vpop.f32.mrf.mxu2 }
 0x245   : > { %3039 = vmatmul.msk.f32.gmra.mxu0 %vm415_vm1, %v3887_v51  ;;  %v1932_v51 = vsel %vm777_vm3, %v1930_v5, %v1931_v56  ;;  %v4349_v58 = vpop.f32.mrf.mxu1 }
 0x24a   : > { %v4346_v45 = vpop.f32.mrf.mxu0 }
 0x24b   : > { %4999 = vst [vmem:[#allocation9_spill] sm:$0xff] %v4346_v45  ;;  %2270 = vmatmul.f32.gmra.mxu1 %v4881_v53  ;;  %v4355_v19 = vpop.f32.mrf.mxu2 }
 0x24d   : > { %3040 = vmatmul.msk.f32.gmra.mxu0 %vm415_vm1, %v1932_v51  ;;  %v4365_v63 = vpop.f32.mrf.mxu1 }
 0x252   : > { %v4353_v1 = vpop.f32.mrf.mxu0 }
 0x253   : > { %5000 = vst [vmem:[#allocation15_spill] sm:$0xff] %v4353_v1  ;;  %2273 = vmatmul.f32.gmra.mxu1 %v4881_v53  ;;  %v4394_v1 = vpop.f32.mrf.mxu3 }
 0x255   : > { %3041 = vmatmul.msk.f32.gmra.mxu0 %vm415_vm1, %v3359_v39  ;;  %v4372_v39 = vpop.f32.mrf.mxu2  ;;  %v4375_v56 = vpop.f32.mrf.mxu1 }
 0x25a   : > { %v4368_v5 = vpop.f32.mrf.mxu0 }
 0x25b   : > { %5001 = vst [vmem:[#allocation18_spill] sm:$0xff] %v4368_v5  ;;  %2276 = vmatmul.f32.gmra.mxu1 %v4881_v53  ;;  %v4419_v45 = vpop.f32.mrf.mxu3 }
 0x25d   : > { %3042 = vmatmul.msk.f32.gmra.mxu0 %vm415_vm1, %v3379_v50  ;;  %v4388_v50 = vpop.f32.mrf.mxu2 }
 0x262   : > { %v4377_v51 = vpop.f32.mrf.mxu0 }
 0x263   : > { %5002 = vst [vmem:[#allocation16_spill] sm:$0xff] %v4377_v51  ;;  %2279 = vmatmul.f32.gmra.mxu1 %v4881_v53  ;;  %v4392_v51 = vpop.f32.mrf.mxu1 }
 0x264   : > { %5004 = vst [vmem:[#allocation19_spill] sm:$0xff] %v4392_v51 }
 0x265   : > { %3043 = vmatmul.msk.f32.gmra.mxu0 %vm415_vm1, %v3399_v0  ;;  %v3068_v0 = vld [vmem:[%s4823_s2 + $0x98] sm:$0xff]  ;;  %v4405_v55 = vpop.f32.mrf.mxu2 }
 0x266   : > { %2370 = vmatpush.msra.mxu2 %v3068_v0  ;;  %v3065_v0 = vld [vmem:[%s4823_s2 + $0x80] sm:$0xff] }
 0x268   : > { %2371 = vmatpush.msra.mxu2 %v3067_v20  ;;  %v3084_v20 = vld [vmem:[%s4823_s2 + $0x118] sm:$0xff] }
 0x269   : > { %2532 = vmatpush.msra.mxu3 %v3084_v20  ;;  %v1934_v20 = vrot.slane %v3965_v48, 2 }
 0x26a   : > { %v4390_v5 = vpop.f32.mrf.mxu0 }
 0x26b   : > { %5003 = vst [vmem:[#allocation13_spill] sm:$0xff] %v4390_v5  ;;  %2282 = vmatmul.f32.gmra.mxu1 %v4881_v53  ;;  %v4412_v53 = vpop.f32.mrf.mxu1 }
 0x26c   : > { %5006 = vst [vmem:[#allocation20_spill] sm:$0xff] %v4412_v53  ;;  %v4432_v53 = vpop.f32.mrf.mxu3 }
 0x26d   : > { %3044 = vmatmul.msk.f32.gmra.mxu0 %vm415_vm1, %v3419_v11  ;;  %v3066_v11 = vld [vmem:[%s4823_s2 + $0x88] sm:$0xff] }
 0x26e   : > { %2372 = vmatpush.msra.mxu2 %v3066_v11  ;;  %v4426_v11 = vpop.f32.mrf.mxu2 }
 0x26f   : > { %5008 = vst [vmem:[#allocation23_spill] sm:$0xff] %v4426_v11 }
 0x270   : > { %2373 = vmatpush.msra.mxu2 %v3065_v0  ;;  %v1933_v0 = vrot.slane %v3962_v60, 2 }
 0x272   : > { %v4407_v5 = vpop.f32.mrf.mxu0 }
 0x273   : > { %5005 = vst [vmem:[#allocation22_spill] sm:$0xff] %v4407_v5 }
 0x274   : > { %v4450_v11 = vpop.f32.mrf.mxu3 }
 0x275   : > { %3045 = vmatmul.msk.f32.gmra.mxu0 %vm415_vm1, %v3439_v22  ;;  %v4430_v22 = vpop.f32.mrf.mxu1 }
 0x276   : > { %5009 = vst [vmem:[#allocation26_spill] sm:$0xff] %v4430_v22  ;;  %v4439_v41 = vpop.f32.mrf.mxu2 }
 0x277   : > { %5011 = vst [vmem:[#allocation24_spill] sm:$0xff] %v4439_v41 }
 0x27a   : > { %v4424_v5 = vpop.f32.mrf.mxu0 }
 0x27b   : > { %5007 = vst [vmem:[#allocation17_spill] sm:$0xff] %v4424_v5  ;;  %v3083_v5 = vld [vmem:[%s4823_s2 + $0x110] sm:$0xff] }
 0x27c   : > { %2533 = vmatpush.msra.mxu3 %v3083_v5  ;;  %v4458_v14 = vpop.f32.mrf.mxu3 }
 0x27d   : > { %3046 = vmatmul.msk.f32.gmra.mxu0 %vm415_vm1, %v3459_v42  ;;  %v4445_v42 = vpop.f32.mrf.mxu1 }
 0x27e   : > { %v4453_v60 = vpop.f32.mrf.mxu2 }
 0x282   : > { %v4434_v51 = vpop.f32.mrf.mxu0 }
 0x283   : > { %5010 = vst [vmem:[#allocation25_spill] sm:$0xff] %v4434_v51  ;;  %v1935_v51 = vsel %vm777_vm3, %v1933_v0, %v1934_v20  ;;  %v3082_v0 = vld [vmem:[%s4823_s2 + $0x108] sm:$0xff] }
 0x284   : > { %2534 = vmatpush.msra.mxu3 %v3082_v0 }
 0x285   : > { %3047 = vmatmul.msk.f32.gmra.mxu0 %vm415_vm1, %v3980_v24  ;;  %v4455_v41 = vpop.f32.mrf.mxu1 }
 0x286   : > { %5013 = vst [vmem:[#allocation27_spill] sm:$0xff] %v4455_v41 }
 0x28a   : > { %v4447_v22 = vpop.f32.mrf.mxu0 }
 0x28b   : > { %5012 = vst [vmem:[#allocation21_spill] sm:$0xff] %v4447_v22 }
 0x28d   : > { %3048 = vmatmul.msk.f32.gmra.mxu0 %vm415_vm1, %v1935_v51  ;;  %v4465_v51 = vpop.f32.mrf.mxu2  ;;  %v4468_v41 = vpop.f32.mrf.mxu1 }
 0x292   : > { %v1972_v24 = vpop.f32.mrf.mxu0 }
 0x293   : > { %v2068_v48 = vadd.f32 %v1972_v24, %v4007_v40  ;;  %v4472_v24 = vpop.f32.mrf.mxu3 }
 0x295   : > { %v2100_v5 = vmax.f32 %v2068_v48, 0.0  ;;  %3049 = vmatmul.msk.f32.gmra.mxu0 %vm415_vm1, %v4951_v54 }
 0x297   : > { %2285 = vmatmul.f32.gmra.mxu1 %v2100_v5  ;;  %2374 = vmatmul.f32.vlgmr.msra.gmra.mxu2 %v2100_v5  ;;  %v4475_v5 = vpop.f32.mrf.mxu2 }
 0x29a   : > { %v1975_v20 = vpop.f32.mrf.mxu0 }
 0x29b   : > { %v2069_v22 = vadd.f32 %v1975_v20, %v4018_v62  ;;  %v4479_v62 = vpop.f32.mrf.mxu1 }
 0x29c   : > { %5014 = vst [vmem:[#allocation28_spill] sm:$0xff] %v4479_v62 }
 0x29d   : > { %v2101_v40 = vmax.f32 %v2069_v22, 0.0  ;;  %3050 = vmatmul.msk.f32.gmra.mxu0 %vm415_vm1, %v4955_v43  ;;  %v3081_v43 = vld [vmem:[%s4823_s2 + $0x100] sm:$0xff]  ;;  %v4484_v22 = vpop.f32.mrf.mxu3 }
 0x29e   : > { %2535 = vmatpush.msra.mxu3 %v3081_v43 }
 0x29f   : > { %2288 = vmatmul.f32.gmra.mxu1 %v2101_v40  ;;  %2377 = vmatmul.f32.gmra.mxu2 %v2101_v40 }
 0x2a2   : > { %v1978_v54 = vpop.f32.mrf.mxu0 }
 0x2a3   : > { %v2070_v48 = vadd.f32 %v1978_v54, %v4029_v35  ;;  %v4489_v54 = vpop.f32.mrf.mxu2 }
 0x2a5   : > { %v2102_v0 = vmax.f32 %v2070_v48, 0.0  ;;  %3051 = vmatmul.msk.f32.gmra.mxu0 %vm415_vm1, %v4959_v34  ;;  %v4491_v34 = vpop.f32.mrf.mxu1 }
 0x2a6   : > { %5015 = vst [vmem:[#allocation33_spill] sm:$0xff] %v4491_v34 }
 0x2a7   : > { %2291 = vmatmul.f32.gmra.mxu1 %v2102_v0  ;;  %2380 = vmatmul.f32.gmra.mxu2 %v2102_v0  ;;  %v4493_v0 = vpop.f32.mrf.mxu3 }
 0x2aa   : > { %v1981_v20 = vpop.f32.mrf.mxu0 }
 0x2ab   : > { %v2071_v35 = vadd.f32 %v1981_v20, %v4040_v9  ;;  %v4498_v9 = vpop.f32.mrf.mxu2 }
 0x2ad   : > { %v2103_v40 = vmax.f32 %v2071_v35, 0.0  ;;  %3052 = vmatmul.msk.f32.gmra.mxu0 %vm415_vm1, %v4963_v49  ;;  %v4500_v20 = vpop.f32.mrf.mxu1 }
 0x2ae   : > { %5016 = vst [vmem:[#allocation30_spill] sm:$0xff] %v4500_v20 }
 0x2af   : > { %2294 = vmatmul.f32.gmra.mxu1 %v2103_v40  ;;  %2383 = vmatmul.f32.gmra.mxu2 %v2103_v40  ;;  %v4503_v40 = vpop.f32.mrf.mxu3 }
 0x2b2   : > { %v1984_v48 = vpop.f32.mrf.mxu0 }
 0x2b3   : > { %v2072_v43 = vadd.f32 %v1984_v48, %v4059_v3  ;;  %v4507_v3 = vpop.f32.mrf.mxu2 }
 0x2b5   : > { %v2104_v62 = vmax.f32 %v2072_v43, 0.0  ;;  %3053 = vmatmul.msk.f32.gmra.mxu0 %vm415_vm1, %v4967_v16  ;;  %v4510_v48 = vpop.f32.mrf.mxu1 }
 0x2b6   : > { %5017 = vst [vmem:[#allocation29_spill] sm:$0xff] %v4510_v48 }
 0x2b7   : > { %2297 = vmatmul.f32.gmra.mxu1 %v2104_v62  ;;  %2386 = vmatmul.f32.gmra.mxu2 %v2104_v62  ;;  %v4518_v20 = vpop.f32.mrf.mxu3 }
 0x2ba   : > { %v1987_v49 = vpop.f32.mrf.mxu0 }
 0x2bb   : > { %v2073_v35 = vadd.f32 %v1987_v49, %v4081_v32  ;;  %v1936_v32 = vrot.slane %v4070_v27, 2  ;;  %v1937_v49 = vrot.slane %v4073_v44, 2  ;;  %v4523_v48 = vpop.f32.mrf.mxu2  ;;  %v5019_v44 = vld [vmem:[#allocation35_spill] sm:$0xff] }
 0x2bd   : > { %v2105_v34 = vmax.f32 %v2073_v35, 0.0  ;;  %3054 = vmatmul.msk.f32.gmra.mxu0 %vm415_vm1, %v4972_v17  ;;  %v5018_v35 = vld [vmem:[#allocation31_spill] sm:$0xff] }
 0x2be   : > { %v1400_v17 = vadd.f32 %v4110_v18, %v5018_v35  ;;  %v1401_v18 = vadd.f32 %v4128_v13, %v5019_v44  ;;  %v4529_v35 = vpop.f32.mrf.mxu1  ;;  %v5020_v13 = vld [vmem:[#allocation39_spill] sm:$0xff] }
 0x2bf   : > { %2300 = vmatmul.f32.gmra.mxu1 %v2105_v34  ;;  %2389 = vmatmul.f32.gmra.mxu2 %v2105_v34 }
 0x2c2   : > { %v1990_v16 = vpop.f32.mrf.mxu0 }
 0x2c3   : > { %v2074_v62 = vadd.f32 %v1990_v16, %v4102_v33  ;;  %v1938_v33 = vsel %vm777_vm3, %v1936_v32, %v1937_v49  ;;  %v1570_v16 = vadd.f32 %v4253_v4, %v1400_v17  ;;  %v4532_v32 = vpop.f32.mrf.mxu3 }
 0x2c5   : > { %v2106_v43 = vmax.f32 %v2074_v62, 0.0  ;;  %3055 = vmatmul.msk.f32.gmra.mxu0 %vm415_vm1, %v4095_v52  ;;  %v1732_v27 = vadd.f32 %v4286_v15, %v1570_v16 }
 0x2c6   : > { %v4543_v16 = vpop.f32.mrf.mxu1 }
 0x2c7   : > { %2303 = vmatmul.f32.gmra.mxu1 %v2106_v43  ;;  %2392 = vmatmul.f32.gmra.mxu2 %v2106_v43  ;;  %v1906_v43 = vadd.f32 %v4394_v1, %v1732_v27 }
 0x2ca   : > { %v1993_v34 = vpop.f32.mrf.mxu0 }
 0x2cb   : > { %v2075_v62 = vadd.f32 %v1993_v34, %v4116_v38  ;;  %v1571_v38 = vadd.f32 %v4262_v46, %v1401_v18  ;;  %v4538_v34 = vpop.f32.mrf.mxu2 }
 0x2cd   : > { %v2107_v52 = vmax.f32 %v2075_v62, 0.0  ;;  %3056 = vmatmul.msk.f32.gmra.mxu0 %vm415_vm1, %v1938_v33  ;;  %v1733_v15 = vadd.f32 %v4317_v37, %v1571_v38  ;;  %v1402_v33 = vadd.f32 %v4141_v25, %v5020_v13  ;;  %v4546_v37 = vpop.f32.mrf.mxu3  ;;  %v5021_v25 = vld [vmem:[#allocation43_spill] sm:$0xff] }
 0x2ce   : > { %v1403_v44 = vadd.f32 %v4157_v31, %v5021_v25  ;;  %v5022_v31 = vld [vmem:[#allocation47_spill] sm:$0xff] }
 0x2cf   : > { %2306 = vmatmul.f32.gmra.mxu1 %v2107_v52  ;;  %2395 = vmatmul.f32.gmra.mxu2 %v2107_v52  ;;  %v1907_v1 = vadd.f32 %v4419_v45, %v1733_v15  ;;  %v1572_v62 = vadd.f32 %v4293_v30, %v1402_v33  ;;  %v1404_v15 = vadd.f32 %v4170_v23, %v5022_v31  ;;  %v5024_v31 = vld [vmem:[#allocation3_spill] sm:$0xff] }
 0x2d1   : > { %v1574_v13 = vadd.f32 %v4331_v59, %v1404_v15  ;;  %v5026_v15 = vld [vmem:[#allocation4_spill] sm:$0xff] }
 0x2d2   : > { %v1996_v4 = vpop.f32.mrf.mxu0 }
 0x2d3   : > { %v2076_v49 = vadd.f32 %v1996_v4, %v1906_v43  ;;  %v4553_v45 = vpop.f32.mrf.mxu2  ;;  %v1573_v43 = vadd.f32 %v4320_v61, %v1403_v44  ;;  %v4557_v4 = vpop.f32.mrf.mxu1  ;;  %v1736_v33 = vadd.f32 %v4355_v19, %v1574_v13 }
 0x2d5   : > { %v2108_v17 = vmax.f32 %v2076_v49, 0.0  ;;  %3057 = vmatmul.msk.f32.gmra.mxu0 %vm415_vm1, %v4977_v47  ;;  %v1734_v47 = vadd.f32 %v4327_v26, %v1572_v62  ;;  %v1735_v38 = vadd.f32 %v4344_v29, %v1573_v43  ;;  %v4560_v49 = vpop.f32.mrf.mxu3 }
 0x2d7   : > { %2309 = vmatmul.f32.gmra.mxu1 %v2108_v17  ;;  %2398 = vmatmul.f32.gmra.mxu2 %v2108_v17  ;;  %v1908_v18 = vadd.f32 %v4432_v53, %v1734_v47  ;;  %v1909_v53 = vadd.f32 %v4450_v11, %v1735_v38  ;;  %v1910_v11 = vadd.f32 %v4458_v14, %v1736_v33 }
 0x2d8   : > { %2536 = vmatmul.f32.vlgmr.msra.gmra.mxu3 %v2108_v17 }
 0x2da   : > { %v1999_v46 = vpop.f32.mrf.mxu0 }
 0x2db   : > { %v2077_v27 = vadd.f32 %v1999_v46, %v1907_v1  ;;  %v4567_v61 = vpop.f32.mrf.mxu2  ;;  %v4571_v1 = vpop.f32.mrf.mxu1 }
 0x2dd   : > { %v2109_v52 = vmax.f32 %v2077_v27, 0.0  ;;  %3058 = vmatmul.msk.f32.gmra.mxu0 %vm415_vm1, %v4980_v57  ;;  %v4577_v62 = vpop.f32.mrf.mxu3 }
 0x2df   : > { %2312 = vmatmul.f32.gmra.mxu1 %v2109_v52  ;;  %2401 = vmatmul.f32.gmra.mxu2 %v2109_v52 }
 0x2e0   : > { %2539 = vmatmul.f32.gmra.mxu3 %v2109_v52 }
 0x2e2   : > { %v2002_v30 = vpop.f32.mrf.mxu0 }
 0x2e3   : > { %v2078_v26 = vadd.f32 %v2002_v30, %v1908_v18  ;;  %v4581_v47 = vpop.f32.mrf.mxu2 }
 0x2e5   : > { %v2110_v57 = vmax.f32 %v2078_v26, 0.0  ;;  %3059 = vmatmul.msk.f32.gmra.mxu0 %vm415_vm1, %v4983_v36  ;;  %v5023_v36 = vld [vmem:[#allocation49_spill] sm:$0xff] }
 0x2e6   : > { %v1405_v23 = vadd.f32 %v4187_v10, %v5023_v36  ;;  %v4588_v10 = vpop.f32.mrf.mxu1  ;;  %v5029_v36 = vld [vmem:[#allocation19_spill] sm:$0xff] }
 0x2e7   : > { %2315 = vmatmul.f32.gmra.mxu1 %v2110_v57  ;;  %2404 = vmatmul.f32.gmra.mxu2 %v2110_v57 }
 0x2e8   : > { %2542 = vmatmul.f32.gmra.mxu3 %v2110_v57  ;;  %v1575_v27 = vadd.f32 %v4349_v58, %v1405_v23  ;;  %v4591_v58 = vpop.f32.mrf.mxu3 }
 0x2ea   : > { %v2005_v17 = vpop.f32.mrf.mxu0  ;;  %v1737_v52 = vadd.f32 %v4372_v39, %v1575_v27 }
 0x2eb   : > { %v2079_v29 = vadd.f32 %v2005_v17, %v1909_v53  ;;  %v1940_v53 = vrot.slane %v5026_v15, 2  ;;  %v5027_v17 = vld [vmem:[#allocation50_spill] sm:$0xff] }
 0x2ec   : > { %v1911_v14 = vadd.f32 %v4472_v24, %v1737_v52  ;;  %v5037_v15 = vld [vmem:[#allocation26_spill] sm:$0xff] }
 0x2ed   : > { %v2111_v46 = vmax.f32 %v2079_v29, 0.0  ;;  %3060 = vmatmul.msk.f32.gmra.mxu0 %vm415_vm1, %v4986_v12  ;;  %v1406_v12 = vadd.f32 %v4208_v6, %v3799_v2  ;;  %v4597_v2 = vpop.f32.mrf.mxu2  ;;  %v1407_v6 = vadd.f32 %v4230_v21, %v3809_v8  ;;  %v5025_v8 = vld [vmem:[#allocation5_spill] sm:$0xff] }
 0x2ee   : > { %v4602_v24 = vpop.f32.mrf.mxu1  ;;  %v1939_v21 = vrot.slane %v5025_v8, 2 }
 0x2ef   : > { %2318 = vmatmul.f32.gmra.mxu1 %v2111_v46  ;;  %2407 = vmatmul.f32.gmra.mxu2 %v2111_v46  ;;  %v1576_v18 = vadd.f32 %v4365_v63, %v1406_v12  ;;  %v1577_v26 = vadd.f32 %v4375_v56, %v1407_v6  ;;  %v5032_v12 = vld [vmem:[#allocation10_spill] sm:$0xff] }
 0x2f0   : > { %2545 = vmatmul.f32.gmra.mxu3 %v2111_v46  ;;  %v1941_v46 = vsel %vm777_vm3, %v1939_v21, %v1940_v53 }
 0x2f1   : > { %v1738_v30 = vadd.f32 %v4388_v50, %v1576_v18  ;;  %v4605_v50 = vpop.f32.mrf.mxu3 }
 0x2f2   : > { %v2008_v59 = vpop.f32.mrf.mxu0 }
 0x2f3   : > { %v2080_v19 = vadd.f32 %v2008_v59, %v1910_v11  ;;  %v5030_v59 = vld [vmem:[#allocation23_spill] sm:$0xff] }
 0x2f5   : > { %v2112_v25 = vmax.f32 %v2080_v19, 0.0  ;;  %3061 = vmatmul.msk.f32.gmra.mxu0 %vm415_vm1, %v4988_v28  ;;  %v1912_v28 = vadd.f32 %v4484_v22, %v1738_v30  ;;  %v5028_v22 = vld [vmem:[#allocation7_spill] sm:$0xff]  ;;  %v4614_v29 = vpop.f32.mrf.mxu2 }
 0x2f6   : > { %v1408_v13 = vadd.f32 %v5028_v22, %v5027_v17  ;;  %v4617_v33 = vpop.f32.mrf.mxu1 }
 0x2f7   : > { %2321 = vmatmul.f32.gmra.mxu1 %v2112_v25  ;;  %2410 = vmatmul.f32.gmra.mxu2 %v2112_v25 }
 0x2f8   : > { %2548 = vmatmul.f32.gmra.mxu3 %v2112_v25  ;;  %v1578_v23 = vadd.f32 %v5029_v36, %v1408_v13  ;;  %v5031_v25 = vld [vmem:[#allocation51_spill] sm:$0xff] }
 0x2f9   : > { %v4622_v19 = vpop.f32.mrf.mxu3 }
 0x2fa   : > { %v2011_v44 = vpop.f32.mrf.mxu0  ;;  %v1740_v27 = vadd.f32 %v5030_v59, %v1578_v23 }
 0x2fb   : > { %v2081_v39 = vadd.f32 %v2011_v44, %v1911_v14  ;;  %v1409_v14 = vadd.f32 %v5032_v12, %v5031_v25  ;;  %v5040_v12 = vld [vmem:[#allocation54_spill] sm:$0xff] }
 0x2fd   : > { %v2113_v43 = vmax.f32 %v2081_v39, 0.0  ;;  %3062 = vmatmul.msk.f32.gmra.mxu0 %vm415_vm1, %v3795_v7  ;;  %v1739_v7 = vadd.f32 %v4405_v55, %v1577_v26  ;;  %v4628_v44 = vpop.f32.mrf.mxu2  ;;  %v5033_v39 = vld [vmem:[#allocation20_spill] sm:$0xff] }
 0x2fe   : > { %v1579_v30 = vadd.f32 %v5033_v39, %v1409_v14  ;;  %v5041_v14 = vld [vmem:[#allocation11_spill] sm:$0xff] }
 0x2ff   : > { %2324 = vmatmul.f32.gmra.mxu1 %v2113_v43  ;;  %2413 = vmatmul.f32.gmra.mxu2 %v2113_v43  ;;  %v1913_v56 = vadd.f32 %v4493_v0, %v1739_v7  ;;  %v1914_v0 = vadd.f32 %v4503_v40, %v1740_v27  ;;  %v5036_v7 = vld [vmem:[#allocation8_spill] sm:$0xff] }
 0x300   : > { %2551 = vmatmul.f32.gmra.mxu3 %v2113_v43  ;;  %v4631_v43 = vpop.f32.mrf.mxu1 }
 0x302   : > { %v2014_v63 = vpop.f32.mrf.mxu0 }
 0x303   : > { %v2082_v38 = vadd.f32 %v2014_v63, %v1912_v28  ;;  %v5034_v28 = vld [vmem:[#allocation24_spill] sm:$0xff] }
 0x304   : > { %v1741_v63 = vadd.f32 %v5034_v28, %v1579_v30  ;;  %v5042_v30 = vld [vmem:[#allocation27_spill] sm:$0xff] }
 0x305   : > { %v2114_v57 = vmax.f32 %v2082_v38, 0.0  ;;  %3063 = vmatmul.msk.f32.gmra.mxu0 %vm415_vm1, %v5024_v31  ;;  %v5035_v38 = vld [vmem:[#allocation52_spill] sm:$0xff]  ;;  %v4636_v31 = vpop.f32.mrf.mxu3 }
 0x306   : > { %v1915_v40 = vadd.f32 %v4518_v20, %v1741_v63 }
 0x307   : > { %2327 = vmatmul.f32.gmra.mxu1 %v2114_v57  ;;  %2416 = vmatmul.f32.gmra.mxu2 %v2114_v57 }
 0x308   : > { %2554 = vmatmul.f32.gmra.mxu3 %v2114_v57  ;;  %v1410_v57 = vadd.f32 %v5036_v7, %v5035_v38  ;;  %v4643_v13 = vpop.f32.mrf.mxu1  ;;  %v5043_v38 = vld [vmem:[#allocation55_spill] sm:$0xff]  ;;  %v5044_v7 = vld [vmem:[#allocation14_spill] sm:$0xff] }
 0x30a   : > { %v2017_v55 = vpop.f32.mrf.mxu0  ;;  %v1580_v53 = vadd.f32 %v5037_v15, %v1410_v57  ;;  %v1413_v57 = vadd.f32 %v5044_v7, %v5043_v38  ;;  %v5051_v38 = vld [vmem:[#allocation58_spill] sm:$0xff]  ;;  %v5052_v7 = vld [vmem:[#allocation15_spill] sm:$0xff] }
 0x30b   : > { %v2083_v11 = vadd.f32 %v2017_v55, %v1913_v56  ;;  %v5038_v55 = vld [vmem:[#allocation53_spill] sm:$0xff] }
 0x30c   : > { %v1742_v22 = vadd.f32 %v4453_v60, %v1580_v53  ;;  %v1583_v15 = vadd.f32 %v4468_v41, %v1413_v57  ;;  %v1416_v57 = vadd.f32 %v5052_v7, %v5051_v38 }
 0x30d   : > { %v2115_v52 = vmax.f32 %v2083_v11, 0.0  ;;  %3064 = vmatmul.msk.f32.gmra.mxu0 %vm415_vm1, %v1941_v46  ;;  %v5039_v46 = vld [vmem:[#allocation6_spill] sm:$0xff]  ;;  %v4648_v20 = vpop.f32.mrf.mxu3 }
 0x30e   : > { %v1411_v36 = vadd.f32 %v5039_v46, %v5038_v55  ;;  %v1916_v23 = vadd.f32 %v4532_v32, %v1742_v22  ;;  %v5046_v55 = vld [vmem:[#allocation12_spill] sm:$0xff] }
 0x30f   : > { %2330 = vmatmul.f32.gmra.mxu1 %v2115_v52  ;;  %2419 = vmatmul.f32.gmra.mxu2 %v2115_v52 }
 0x310   : > { %2557 = vmatmul.f32.gmra.mxu3 %v2115_v52  ;;  %v1581_v59 = vadd.f32 %v4445_v42, %v1411_v36 }
 0x312   : > { %v2020_v18 = vpop.f32.mrf.mxu0  ;;  %v1743_v60 = vadd.f32 %v4465_v51, %v1581_v59 }
 0x313   : > { %v2084_v6 = vadd.f32 %v2020_v18, %v1914_v0  ;;  %v1412_v0 = vadd.f32 %v5041_v14, %v5040_v12  ;;  %v4656_v18 = vpop.f32.mrf.mxu1  ;;  %v5049_v12 = vld [vmem:[#allocation9_spill] sm:$0xff] }
 0x314   : > { %v1917_v32 = vadd.f32 %v4546_v37, %v1743_v60 }
 0x315   : > { %v2116_v26 = vmax.f32 %v2084_v6, 0.0  ;;  %v1582_v6 = vadd.f32 %v5042_v30, %v1412_v0  ;;  %v4660_v42 = vpop.f32.mrf.mxu3  ;;  %v5050_v30 = vld [vmem:[#allocation33_spill] sm:$0xff] }
 0x317   : > { %2333 = vmatmul.f32.gmra.mxu1 %v2116_v26  ;;  %2422 = vmatmul.f32.gmra.mxu2 %v2116_v26  ;;  %v1744_v63 = vadd.f32 %v4475_v5, %v1582_v6 }
 0x318   : > { %2560 = vmatmul.f32.gmra.mxu3 %v2116_v26 }
 0x31a   : > { %v2023_v8 = vpop.f32.mrf.mxu0  ;;  %v4639_v21 = vpop.f32.mrf.mxu2 }
 0x31b   : > { %v2085_v17 = vadd.f32 %v2023_v8, %v1915_v40  ;;  %v1918_v40 = vadd.f32 %v4560_v49, %v1744_v63  ;;  %v4668_v37 = vpop.f32.mrf.mxu1 }
 0x31d   : > { %v2117_v56 = vmax.f32 %v2085_v17, 0.0  ;;  %v1745_v17 = vadd.f32 %v4489_v54, %v1583_v15  ;;  %v4672_v5 = vpop.f32.mrf.mxu3  ;;  %v5053_v15 = vld [vmem:[#allocation30_spill] sm:$0xff] }
 0x31f   : > { %2336 = vmatmul.f32.gmra.mxu1 %v2117_v56  ;;  %2425 = vmatmul.f32.gmra.mxu2 %v2117_v56  ;;  %v1919_v49 = vadd.f32 %v4577_v62, %v1745_v17 }
 0x320   : > { %2563 = vmatmul.f32.gmra.mxu3 %v2117_v56  ;;  %v5045_v56 = vld [vmem:[#allocation56_spill] sm:$0xff] }
 0x321   : > { %v1414_v46 = vadd.f32 %v5046_v55, %v5045_v56  ;;  %v5054_v55 = vld [vmem:[#allocation59_spill] sm:$0xff] }
 0x322   : > { %v2026_v11 = vpop.f32.mrf.mxu0  ;;  %v4651_v52 = vpop.f32.mrf.mxu2 }
 0x323   : > { %v2086_v27 = vadd.f32 %v2026_v11, %v1916_v23  ;;  %v5047_v11 = vld [vmem:[#allocation28_spill] sm:$0xff]  ;;  %v4680_v41 = vpop.f32.mrf.mxu1 }
 0x324   : > { %v1584_v59 = vadd.f32 %v5047_v11, %v1414_v46  ;;  %v5055_v46 = vld [vmem:[#allocation18_spill] sm:$0xff] }
 0x325   : > { %v2118_v25 = vmax.f32 %v2086_v27, 0.0  ;;  %v4685_v0 = vpop.f32.mrf.mxu3 }
 0x326   : > { %v1746_v54 = vadd.f32 %v4498_v9, %v1584_v59  ;;  %v5056_v59 = vld [vmem:[#allocation29_spill] sm:$0xff] }
 0x327   : > { %2339 = vmatmul.f32.gmra.mxu1 %v2118_v25  ;;  %2428 = vmatmul.f32.gmra.mxu2 %v2118_v25 }
 0x328   : > { %2566 = vmatmul.f32.gmra.mxu3 %v2118_v25  ;;  %v5048_v25 = vld [vmem:[#allocation57_spill] sm:$0xff] }
 0x329   : > { %v1415_v14 = vadd.f32 %v5049_v12, %v5048_v25 }
 0x32a   : > { %v2029_v39 = vpop.f32.mrf.mxu0  ;;  %v4663_v26 = vpop.f32.mrf.mxu2 }
 0x32b   : > { %v2087_v28 = vadd.f32 %v2029_v39, %v1917_v32  ;;  %v1920_v32 = vadd.f32 %v4591_v58, %v1746_v54  ;;  %v1585_v6 = vadd.f32 %v5050_v30, %v1415_v14  ;;  %v4692_v9 = vpop.f32.mrf.mxu1  ;;  %v5057_v14 = vld [vmem:[#allocation60_spill] sm:$0xff] }
 0x32d   : > { %v2119_v51 = vmax.f32 %v2087_v28, 0.0  ;;  %v1747_v63 = vadd.f32 %v4507_v3, %v1585_v6  ;;  %v4697_v58 = vpop.f32.mrf.mxu3 }
 0x32f   : > { %2342 = vmatmul.f32.gmra.mxu1 %v2119_v51  ;;  %2431 = vmatmul.f32.gmra.mxu2 %v2119_v51 }
 0x330   : > { %2569 = vmatmul.f32.gmra.mxu3 %v2119_v51 }
 0x332   : > { %v2032_v8 = vpop.f32.mrf.mxu0  ;;  %v4676_v36 = vpop.f32.mrf.mxu2 }
 0x333   : > { %v2088_v53 = vadd.f32 %v2032_v8, %v1918_v40  ;;  %v1921_v40 = vadd.f32 %v4605_v50, %v1747_v63 }
 0x335   : > { %v2120_v22 = vmax.f32 %v2088_v53, 0.0  ;;  %v1586_v53 = vadd.f32 %v5053_v15, %v1416_v57  ;;  %v4709_v54 = vpop.f32.mrf.mxu3  ;;  %v5060_v57 = vld [vmem:[#allocation13_spill] sm:$0xff] }
 0x337   : > { %2345 = vmatmul.f32.gmra.mxu1 %v2120_v22  ;;  %2434 = vmatmul.f32.gmra.mxu2 %v2120_v22  ;;  %v1748_v3 = vadd.f32 %v4523_v48, %v1586_v53 }
 0x338   : > { %2572 = vmatmul.f32.gmra.mxu3 %v2120_v22 }
 0x339   : > { %v1922_v50 = vadd.f32 %v4622_v19, %v1748_v3  ;;  %v2376_v19 = vadd.f32 %v4639_v21, %v4617_v33 }
 0x33a   : > { %v2035_v23 = vpop.f32.mrf.mxu0  ;;  %v4688_v62 = vpop.f32.mrf.mxu2 }
 0x33b   : > { %v2089_v27 = vadd.f32 %v2035_v23, %v1919_v49  ;;  %v1417_v49 = vadd.f32 %v5055_v46, %v5054_v55  ;;  %v4705_v23 = vpop.f32.mrf.mxu1  ;;  %v5061_v55 = vld [vmem:[#allocation62_spill] sm:$0xff] }
 0x33c   : > { %v5062_v46 = vld [vmem:[#allocation22_spill] sm:$0xff] }
 0x33d   : > { %v2121_v60 = vmax.f32 %v2089_v27, 0.0  ;;  %v1587_v27 = vadd.f32 %v5056_v59, %v1417_v49  ;;  %v1420_v49 = vadd.f32 %v5062_v46, %v5061_v55 }
 0x33f   : > { %2348 = vmatmul.f32.gmra.mxu1 %v2121_v60  ;;  %2437 = vmatmul.f32.gmra.mxu2 %v2121_v60  ;;  %v1749_v48 = vadd.f32 %v4538_v34, %v1587_v27 }
 0x340   : > { %2575 = vmatmul.f32.gmra.mxu3 %v2121_v60 }
 0x341   : > { %v1923_v30 = vadd.f32 %v4636_v31, %v1749_v48  ;;  %v5059_v31 = vld [vmem:[#allocation61_spill] sm:$0xff] }
 0x342   : > { %v2038_v39 = vpop.f32.mrf.mxu0  ;;  %v4700_v17 = vpop.f32.mrf.mxu2  ;;  %v1419_v33 = vadd.f32 %v5060_v57, %v5059_v31 }
 0x343   : > { %v2090_v28 = vadd.f32 %v2038_v39, %v1920_v32  ;;  %v5058_v32 = vld [vmem:[#allocation16_spill] sm:$0xff] }
 0x344   : > { %v1418_v39 = vadd.f32 %v5058_v32, %v5057_v14  ;;  %v1589_v15 = vadd.f32 %v4543_v16, %v1419_v33  ;;  %v2382_v16 = vadd.f32 %v4663_v26, %v4643_v13 }
 0x345   : > { %v2122_v51 = vmax.f32 %v2090_v28, 0.0 }
 0x346   : > { %v1588_v28 = vadd.f32 %v4529_v35, %v1418_v39  ;;  %v1751_v3 = vadd.f32 %v4567_v61, %v1589_v15 }
 0x347   : > { %2351 = vmatmul.f32.gmra.mxu1 %v2122_v51  ;;  %2440 = vmatmul.f32.gmra.mxu2 %v2122_v51 }
 0x348   : > { %2578 = vmatmul.f32.gmra.mxu3 %v2122_v51  ;;  %v1750_v38 = vadd.f32 %v4553_v45, %v1588_v28 }
 0x34a   : > { %v2041_v8 = vpop.f32.mrf.mxu0  ;;  %v4712_v25 = vpop.f32.mrf.mxu2  ;;  %v1924_v35 = vadd.f32 %v4648_v20, %v1750_v38  ;;  %v1925_v20 = vadd.f32 %v4660_v42, %v1751_v3  ;;  %v5064_v42 = vld [vmem:[#allocation17_spill] sm:$0xff] }
 0x34b   : > { %v2091_v22 = vadd.f32 %v2041_v8, %v1921_v40  ;;  %v2379_v40 = vadd.f32 %v4651_v52, %v4631_v43  ;;  %v1590_v52 = vadd.f32 %v4557_v4, %v1420_v49  ;;  %v2385_v4 = vadd.f32 %v4676_v36, %v4656_v18 }
 0x34d   : > { %v2123_v56 = vmax.f32 %v2091_v22, 0.0 }
 0x34f   : > { %2354 = vmatmul.f32.gmra.mxu1 %v2123_v56  ;;  %2443 = vmatmul.f32.gmra.mxu2 %v2123_v56 }
 0x350   : > { %2581 = vmatmul.f32.gmra.mxu3 %v2123_v56 }
 0x352   : > { %v2044_v11 = vpop.f32.mrf.mxu0  ;;  %v4730_v21 = vpop.f32.mrf.mxu2 }
 0x353   : > { %v2092_v60 = vadd.f32 %v2044_v11, %v1922_v50  ;;  %v4746_v11 = vpop.f32.mrf.mxu1 }
 0x355   : > { %v2124_v12 = vmax.f32 %v2092_v60, 0.0  ;;  %v1752_v60 = vadd.f32 %v4581_v47, %v1590_v52 }
 0x357   : > { %2446 = vmatmul.f32.gmra.mxu2 %v2124_v12  ;;  %v1926_v13 = vadd.f32 %v4672_v5, %v1752_v60 }
 0x358   : > { %2584 = vmatmul.f32.gmra.mxu3 %v2124_v12  ;;  %v5063_v12 = vld [vmem:[#allocation63_spill] sm:$0xff] }
 0x359   : > { %v1421_v14 = vadd.f32 %v5064_v42, %v5063_v12 }
 0x35a   : > { %v2047_v6 = vpop.f32.mrf.mxu0  ;;  %v4741_v50 = vpop.f32.mrf.mxu2 }
 0x35b   : > { %v2093_v63 = vadd.f32 %v2047_v6, %v1923_v30  ;;  %v2537_v34 = vpop.f32.mrf.mxu3  ;;  %v1591_v32 = vadd.f32 %v4571_v1, %v1421_v14  ;;  %v2289_v28 = vpop.f32.mrf.mxu1  ;;  %v2388_v1 = vadd.f32 %v4688_v62, %v4668_v37 }
 0x35c   : > { %v2633_v51 = vadd.f32 %v2537_v34, %v2376_v19  ;;  %v5065_v34 = vld [vmem:[#allocation64_spill] sm:$0xff] }
 0x35d   : > { %v2125_v7 = vmax.f32 %v2093_v63, 0.0  ;;  %v1753_v6 = vadd.f32 %v4597_v2, %v1591_v32 }
 0x35e   : > { %2665 = vst [vmem:[%s4724_s9] sm:$0xff] %v2633_v51  ;;  %v5066_v51 = vld [vmem:[#allocation25_spill] sm:$0xff] }
 0x35f   : > { %2449 = vmatmul.f32.gmra.mxu2 %v2125_v7  ;;  %v1422_v5 = vadd.f32 %v5066_v51, %v5065_v34  ;;  %v1927_v18 = vadd.f32 %v4685_v0, %v1753_v6 }
 0x360   : > { %2587 = vmatmul.f32.gmra.mxu3 %v2125_v7 }
 0x361   : > { %v1592_v38 = vadd.f32 %v4588_v10, %v1422_v5  ;;  %v2391_v10 = vadd.f32 %v4700_v17, %v4680_v41  ;;  %v2394_v41 = vadd.f32 %v4712_v25, %v4692_v9  ;;  %v2400_v9 = vadd.f32 %v4741_v50, %v4746_v11 }
 0x362   : > { %v2050_v8 = vpop.f32.mrf.mxu0  ;;  %v4756_v39 = vpop.f32.mrf.mxu2 }
 0x363   : > { %v2094_v53 = vadd.f32 %v2050_v8, %v1924_v35  ;;  %v2540_v45 = vpop.f32.mrf.mxu3  ;;  %v1754_v57 = vadd.f32 %v4614_v29, %v1592_v38  ;;  %v5068_v8 = vld [vmem:[#allocation21_spill] sm:$0xff] }
 0x364   : > { %v2634_v22 = vadd.f32 %v2540_v45, %v2379_v40  ;;  %v5067_v40 = vld [vmem:[#allocation65_spill] sm:$0xff] }
 0x365   : > { %v2126_v56 = vmax.f32 %v2094_v53, 0.0  ;;  %v1423_v15 = vadd.f32 %v5068_v8, %v5067_v40  ;;  %v2292_v53 = vpop.f32.mrf.mxu1  ;;  %v1928_v37 = vadd.f32 %v4697_v58, %v1754_v57 }
 0x366   : > { %2666 = vst [vmem:[%s4724_s9 + $0x8] sm:$0xff] %v2634_v22 }
 0x367   : > { %2452 = vmatmul.f32.gmra.mxu2 %v2126_v56  ;;  %v1593_v62 = vadd.f32 %v4602_v24, %v1423_v15 }
 0x368   : > { %2590 = vmatmul.f32.gmra.mxu3 %v2126_v56 }
 0x369   : > { %v1755_v3 = vadd.f32 %v4628_v44, %v1593_v62 }
 0x36a   : > { %v2053_v43 = vpop.f32.mrf.mxu0  ;;  %v2405_v33 = vpop.f32.mrf.mxu2 }
 0x36b   : > { %v2095_v61 = vadd.f32 %v2053_v43, %v1925_v20  ;;  %v2543_v59 = vpop.f32.mrf.mxu3  ;;  %v1929_v46 = vadd.f32 %v4709_v54, %v1755_v3  ;;  %v2397_v43 = vadd.f32 %v4730_v21, %v4705_v23  ;;  %v2403_v23 = vadd.f32 %v4756_v39, %v2289_v28 }
 0x36c   : > { %v2635_v27 = vadd.f32 %v2543_v59, %v2382_v16  ;;  %v5069_v59 = vmov 0.0  }
 0x36d   : > { %v2127_v48 = vmax.f32 %v2095_v61, 0.0  ;;  %v2295_v58 = vpop.f32.mrf.mxu1 }
 0x36e   : > { %2667 = vst [vmem:[%s4724_s9 + $0x10] sm:$0xff] %v2635_v27 }
 0x36f   : > { %2455 = vmatmul.f32.gmra.mxu2 %v2127_v48 }
 0x370   : > { %2593 = vmatmul.f32.gmra.mxu3 %v2127_v48 }
 0x372   : > { %v2056_v26 = vpop.f32.mrf.mxu0  ;;  %v2408_v55 = vpop.f32.mrf.mxu2 }
 0x373   : > { %v2096_v30 = vadd.f32 %v2056_v26, %v1926_v13  ;;  %v2546_v47 = vpop.f32.mrf.mxu3  ;;  %v2406_v13 = vadd.f32 %v2405_v33, %v2292_v53  ;;  %v2409_v32 = vadd.f32 %v2408_v55, %v2295_v58 }
 0x374   : > { %v2636_v19 = vadd.f32 %v2546_v47, %v2385_v4 }
 0x375   : > { %v2128_v63 = vmax.f32 %v2096_v30, 0.0  ;;  %v2298_v52 = vpop.f32.mrf.mxu1 }
 0x376   : > { %2668 = vst [vmem:[%s4724_s9 + $0x18] sm:$0xff] %v2636_v19 }
 0x377   : > { %2458 = vmatmul.f32.gmra.mxu2 %v2128_v63 }
 0x378   : > { %2596 = vmatmul.f32.gmra.mxu3 %v2128_v63 }
 0x37a   : > { %v2059_v36 = vpop.f32.mrf.mxu0  ;;  %v2411_v44 = vpop.f32.mrf.mxu2 }
 0x37b   : > { %v2097_v7 = vadd.f32 %v2059_v36, %v1927_v18  ;;  %v2549_v31 = vpop.f32.mrf.mxu3  ;;  %v2412_v19 = vadd.f32 %v2411_v44, %v2298_v52 }
 0x37c   : > { %v2637_v2 = vadd.f32 %v2549_v31, %v2388_v1 }
 0x37d   : > { %v2129_v35 = vmax.f32 %v2097_v7, 0.0  ;;  %v2301_v48 = vpop.f32.mrf.mxu1 }
 0x37e   : > { %2669 = vst [vmem:[%s4724_s9 + $0x20] sm:$0xff] %v2637_v2 }
 0x37f   : > { %2461 = vmatmul.f32.gmra.mxu2 %v2129_v35 }
 0x380   : > { %2599 = vmatmul.f32.gmra.mxu3 %v2129_v35 }
 0x382   : > { %v2062_v0 = vpop.f32.mrf.mxu0  ;;  %v2414_v25 = vpop.f32.mrf.mxu2 }
 0x383   : > { %v2098_v45 = vadd.f32 %v2062_v0, %v1928_v37  ;;  %v2552_v29 = vpop.f32.mrf.mxu3  ;;  %v2415_v34 = vadd.f32 %v2414_v25, %v2301_v48 }
 0x384   : > { %v2638_v22 = vadd.f32 %v2552_v29, %v2391_v10 }
 0x385   : > { %v2130_v56 = vmax.f32 %v2098_v45, 0.0  ;;  %v2304_v14 = vpop.f32.mrf.mxu1 }
 0x386   : > { %2670 = vst [vmem:[%s4724_s9 + $0x28] sm:$0xff] %v2638_v22 }
 0x387   : > { %2464 = vmatmul.f32.gmra.mxu2 %v2130_v56 }
 0x388   : > { %2602 = vmatmul.f32.gmra.mxu3 %v2130_v56 }
 0x38a   : > { %v2065_v17 = vpop.f32.mrf.mxu0  ;;  %v2417_v42 = vpop.f32.mrf.mxu2 }
 0x38b   : > { %v2099_v24 = vadd.f32 %v2065_v17, %v1929_v46  ;;  %v2555_v49 = vpop.f32.mrf.mxu3  ;;  %v2418_v36 = vadd.f32 %v2417_v42, %v2304_v14 }
 0x38c   : > { %v2639_v20 = vadd.f32 %v2555_v49, %v2394_v41 }
 0x38d   : > { %v2131_v16 = vmax.f32 %v2099_v24, 0.0  ;;  %v2307_v26 = vpop.f32.mrf.mxu1 }
 0x38e   : > { %2671 = vst [vmem:[%s4724_s9 + $0x30] sm:$0xff] %v2639_v20 }
 0x38f   : > { %2467 = vmatmul.f32.gmra.mxu2 %v2131_v16 }
 0x390   : > { %2605 = vmatmul.f32.gmra.mxu3 %v2131_v16 }
 0x392   : > { %v2420_v4 = vpop.f32.mrf.mxu2 }
 0x393   : > { %v2558_v54 = vpop.f32.mrf.mxu3  ;;  %v2421_v57 = vadd.f32 %v2420_v4, %v2307_v26 }
 0x394   : > { %v2640_v61 = vadd.f32 %v2558_v54, %v2397_v43 }
 0x395   : > { %v2310_v6 = vpop.f32.mrf.mxu1 }
 0x396   : > { %2672 = vst [vmem:[%s4724_s9 + $0x38] sm:$0xff] %v2640_v61 }
 0x398   : > { %2608 = vmatmul.f32.gmra.mxu3 %v5069_v59 }
 0x39a   : > { %v2423_v47 = vpop.f32.mrf.mxu2 }
 0x39b   : > { %v2561_v27 = vpop.f32.mrf.mxu3  ;;  %v2424_v15 = vadd.f32 %v2423_v47, %v2310_v6 }
 0x39c   : > { %v2641_v60 = vadd.f32 %v2561_v27, %v2400_v9 }
 0x39d   : > { %v2313_v1 = vpop.f32.mrf.mxu1 }
 0x39e   : > { %2673 = vst [vmem:[%s4724_s9 + $0x40] sm:$0xff] %v2641_v60 }
 0x3a0   : > { %2611 = vmatmul.f32.gmra.mxu3 %v5069_v59 }
 0x3a2   : > { %v2426_v51 = vpop.f32.mrf.mxu2 }
 0x3a3   : > { %v2564_v21 = vpop.f32.mrf.mxu3  ;;  %v2427_v0 = vadd.f32 %v2426_v51, %v2313_v1 }
 0x3a4   : > { %v2642_v12 = vadd.f32 %v2564_v21, %v2403_v23 }
 0x3a5   : > { %v2316_v2 = vpop.f32.mrf.mxu1 }
 0x3a6   : > { %2674 = vst [vmem:[%s4724_s9 + $0x48] sm:$0xff] %v2642_v12 }
 0x3a8   : > { %2614 = vmatmul.f32.gmra.mxu3 %v5069_v59 }
 0x3aa   : > { %v2429_v31 = vpop.f32.mrf.mxu2 }
 0x3ab   : > { %v2567_v50 = vpop.f32.mrf.mxu3  ;;  %v2430_v22 = vadd.f32 %v2429_v31, %v2316_v2 }
 0x3ac   : > { %v2643_v11 = vadd.f32 %v2567_v50, %v2406_v13 }
 0x3ad   : > { %v2319_v8 = vpop.f32.mrf.mxu1 }
 0x3ae   : > { %2675 = vst [vmem:[%s4724_s9 + $0x50] sm:$0xff] %v2643_v11 }
 0x3b0   : > { %2617 = vmatmul.f32.gmra.mxu3 %v5069_v59 }
 0x3b2   : > { %v2432_v40 = vpop.f32.mrf.mxu2 }
 0x3b3   : > { %v2570_v30 = vpop.f32.mrf.mxu3  ;;  %v2433_v58 = vadd.f32 %v2432_v40, %v2319_v8 }
 0x3b4   : > { %v2644_v39 = vadd.f32 %v2570_v30, %v2409_v32 }
 0x3b5   : > { %v2322_v62 = vpop.f32.mrf.mxu1 }
 0x3b6   : > { %2676 = vst [vmem:[%s4724_s9 + $0x58] sm:$0xff] %v2644_v39 }
 0x3b8   : > { %2620 = vmatmul.f32.gmra.mxu3 %v5069_v59 }
 0x3ba   : > { %v2435_v10 = vpop.f32.mrf.mxu2 }
 0x3bb   : > { %v2573_v28 = vpop.f32.mrf.mxu3  ;;  %v2436_v20 = vadd.f32 %v2435_v10, %v2322_v62 }
 0x3bc   : > { %v2645_v63 = vadd.f32 %v2573_v28, %v2412_v19 }
 0x3bd   : > { %v2325_v46 = vpop.f32.mrf.mxu1 }
 0x3be   : > { %2677 = vst [vmem:[%s4724_s9 + $0x60] sm:$0xff] %v2645_v63 }
 0x3c0   : > { %2623 = vmatmul.f32.gmra.mxu3 %v5069_v59 }
 0x3c2   : > { %v2438_v3 = vpop.f32.mrf.mxu2 }
 0x3c3   : > { %v2576_v5 = vpop.f32.mrf.mxu3  ;;  %v2439_v54 = vadd.f32 %v2438_v3, %v2325_v46 }
 0x3c4   : > { %v2646_v18 = vadd.f32 %v2576_v5, %v2415_v34 }
 0x3c5   : > { %v2328_v49 = vpop.f32.mrf.mxu1 }
 0x3c6   : > { %2678 = vst [vmem:[%s4724_s9 + $0x68] sm:$0xff] %v2646_v18 }
 0x3c8   : > { %2626 = vmatmul.f32.gmra.mxu3 %v5069_v59 }
 0x3ca   : > { %v2441_v24 = vpop.f32.mrf.mxu2 }
 0x3cb   : > { %v2579_v38 = vpop.f32.mrf.mxu3  ;;  %v2442_v25 = vadd.f32 %v2441_v24, %v2328_v49 }
 0x3cc   : > { %v2647_v7 = vadd.f32 %v2579_v38, %v2418_v36 }
 0x3cd   : > { %v2331_v52 = vpop.f32.mrf.mxu1 }
 0x3ce   : > { %2679 = vst [vmem:[%s4724_s9 + $0x70] sm:$0xff] %v2647_v7 }
 0x3d0   : > { %2629 = vmatmul.f32.gmra.mxu3 %v5069_v59 }
 0x3d2   : > { %v2444_v43 = vpop.f32.mrf.mxu2 }
 0x3d3   : > { %v2582_v33 = vpop.f32.mrf.mxu3  ;;  %v2445_v23 = vadd.f32 %v2444_v43, %v2331_v52 }
 0x3d4   : > { %v2648_v35 = vadd.f32 %v2582_v33, %v2421_v57 }
 0x3d5   : > { %v2334_v27 = vpop.f32.mrf.mxu1 }
 0x3d6   : > { %2680 = vst [vmem:[%s4724_s9 + $0x78] sm:$0xff] %v2648_v35 }
 0x3da   : > { %v2447_v9 = vpop.f32.mrf.mxu2 }
 0x3db   : > { %v2585_v53 = vpop.f32.mrf.mxu3  ;;  %v2448_v13 = vadd.f32 %v2447_v9, %v2334_v27 }
 0x3dc   : > { %v2649_v37 = vadd.f32 %v2585_v53, %v2424_v15 }
 0x3dd   : > { %v2337_v14 = vpop.f32.mrf.mxu1 }
 0x3de   : > { %2681 = vst [vmem:[%s4724_s9 + $0x80] sm:$0xff] %v2649_v37 }
 0x3e2   : > { %v2450_v21 = vpop.f32.mrf.mxu2 }
 0x3e3   : > { %v2588_v45 = vpop.f32.mrf.mxu3  ;;  %v2451_v32 = vadd.f32 %v2450_v21, %v2337_v14 }
 0x3e4   : > { %v2650_v29 = vadd.f32 %v2588_v45, %v2427_v0 }
 0x3e5   : > { %v2340_v26 = vpop.f32.mrf.mxu1 }
 0x3e6   : > { %2682 = vst [vmem:[%s4724_s9 + $0x88] sm:$0xff] %v2650_v29 }
 0x3ea   : > { %v2453_v4 = vpop.f32.mrf.mxu2 }
 0x3eb   : > { %v2591_v56 = vpop.f32.mrf.mxu3  ;;  %v2454_v6 = vadd.f32 %v2453_v4, %v2340_v26 }
 0x3ec   : > { %v2651_v55 = vadd.f32 %v2591_v56, %v2430_v22 }
 0x3ed   : > { %v2343_v19 = vpop.f32.mrf.mxu1 }
 0x3ee   : > { %2683 = vst [vmem:[%s4724_s9 + $0x90] sm:$0xff] %v2651_v55 }
 0x3f2   : > { %v2456_v47 = vpop.f32.mrf.mxu2 }
 0x3f3   : > { %v2594_v41 = vpop.f32.mrf.mxu3  ;;  %v2457_v51 = vadd.f32 %v2456_v47, %v2343_v19 }
 0x3f4   : > { %v2652_v17 = vadd.f32 %v2594_v41, %v2433_v58 }
 0x3f5   : > { %v2346_v5 = vpop.f32.mrf.mxu1 }
 0x3f6   : > { %2684 = vst [vmem:[%s4724_s9 + $0x98] sm:$0xff] %v2652_v17 }
 0x3fa   : > { %v2459_v34 = vpop.f32.mrf.mxu2 }
 0x3fb   : > { %v2597_v16 = vpop.f32.mrf.mxu3  ;;  %v2460_v36 = vadd.f32 %v2459_v34, %v2346_v5 }
 0x3fc   : > { %v2653_v44 = vadd.f32 %v2597_v16, %v2436_v20 }
 0x3fd   : > { %v2349_v2 = vpop.f32.mrf.mxu1 }
 0x3fe   : > { %2685 = vst [vmem:[%s4724_s9 + $0xa0] sm:$0xff] %v2653_v44 }
 0x402   : > { %v2462_v38 = vpop.f32.mrf.mxu2 }
 0x403   : > { %v2600_v61 = vpop.f32.mrf.mxu3  ;;  %v2463_v57 = vadd.f32 %v2462_v38, %v2349_v2 }
 0x404   : > { %v2654_v59 = vadd.f32 %v2600_v61, %v2439_v54 }
 0x405   : > { %v2352_v8 = vpop.f32.mrf.mxu1 }
 0x406   : > { %2686 = vst [vmem:[%s4724_s9 + $0xa8] sm:$0xff] %v2654_v59 }
 0x40a   : > { %v2465_v40 = vpop.f32.mrf.mxu2 }
 0x40b   : > { %v2603_v60 = vpop.f32.mrf.mxu3  ;;  %v2466_v15 = vadd.f32 %v2465_v40, %v2352_v8 }
 0x40c   : > { %v2655_v48 = vadd.f32 %v2603_v60, %v2442_v25 }
 0x40d   : > { %v2355_v0 = vpop.f32.mrf.mxu1 }
 0x40e   : > { %2687 = vst [vmem:[%s4724_s9 + $0xb0] sm:$0xff] %v2655_v48 }
 0x412   : > { %v2468_v10 = vpop.f32.mrf.mxu2 }
 0x413   : > { %v2606_v12 = vpop.f32.mrf.mxu3  ;;  %v2469_v62 = vadd.f32 %v2468_v10, %v2355_v0 }
 0x414   : > { %v2656_v42 = vadd.f32 %v2606_v12, %v2445_v23 }
 0x416   : > { %2688 = vst [vmem:[%s4724_s9 + $0xb8] sm:$0xff] %v2656_v42 }
 0x41b   : > { %v2609_v50 = vpop.f32.mrf.mxu3 }
 0x41c   : > { %v2657_v11 = vadd.f32 %v2609_v50, %v2448_v13 }
 0x41e   : > { %2689 = vst [vmem:[%s4724_s9 + $0xc0] sm:$0xff] %v2657_v11 }
 0x423   : > { %v2612_v30 = vpop.f32.mrf.mxu3 }
 0x424   : > { %v2658_v39 = vadd.f32 %v2612_v30, %v2451_v32 }
 0x426   : > { %2690 = vst [vmem:[%s4724_s9 + $0xc8] sm:$0xff] %v2658_v39 }
 0x42b   : > { %v2615_v28 = vpop.f32.mrf.mxu3 }
 0x42c   : > { %v2659_v63 = vadd.f32 %v2615_v28, %v2454_v6 }
 0x42e   : > { %2691 = vst [vmem:[%s4724_s9 + $0xd0] sm:$0xff] %v2659_v63 }
 0x433   : > { %v2618_v18 = vpop.f32.mrf.mxu3 }
 0x434   : > { %v2660_v1 = vadd.f32 %v2618_v18, %v2457_v51 }
 0x436   : > { %2692 = vst [vmem:[%s4724_s9 + $0xd8] sm:$0xff] %v2660_v1 }
 0x43b   : > { %v2621_v7 = vpop.f32.mrf.mxu3 }
 0x43c   : > { %v2661_v31 = vadd.f32 %v2621_v7, %v2460_v36 }
 0x43e   : > { %2693 = vst [vmem:[%s4724_s9 + $0xe0] sm:$0xff] %v2661_v31 }
 0x443   : > { %v2624_v33 = vpop.f32.mrf.mxu3 }
 0x444   : > { %v2662_v35 = vadd.f32 %v2624_v33, %v2463_v57 }
 0x446   : > { %2694 = vst [vmem:[%s4724_s9 + $0xe8] sm:$0xff] %v2662_v35 }
 0x44b   : > { %v2627_v53 = vpop.f32.mrf.mxu3 }
 0x44c   : > { %v2663_v37 = vadd.f32 %v2627_v53, %v2466_v15 }
 0x44e   : > { %2695 = vst [vmem:[%s4724_s9 + $0xf0] sm:$0xff] %v2663_v37 }
 0x453   : > { %v2630_v45 = vpop.f32.mrf.mxu3 }
 0x454   : > { %v2664_v29 = vadd.f32 %v2630_v45, %v2469_v62 }
 0x456   : > { %2696 = vst [vmem:[%s4724_s9 + $0xf8] sm:$0xff] %v2664_v29 }
 0x457 PF: > { %s13_s12 = sadd.s32 1, %s3116_s12  }
 0x458   : > { %p10_p4 = scmp.ge.s32.totalorder %s13_s12, 4  }
 0x45a   :  { %12 = sbr.rel (!%p10_p4) target bundleno = 1 (0x1), region = 72 }

</bundles_post_ra>
